<compile_context>
chip_gen: v5e
topology: v5e:2x2
jax: 0.10.0
libtpu: 0.0.40
codegen_flags: <defaults>
</compile_context>

<pallas_src>
import functools

import jax
import jax.numpy as jnp
from jax.experimental import pallas as pl
from jax.experimental.pallas import tpu as pltpu


# ------------------------------ Pallas kernel ------------------------------ #

def _basic_block_kernel(*refs, stride, Ho, Wo, proj):
    """Fully fused BasicBlock: conv3x3(s)+BN+ReLU -> conv3x3(1)+BN (+res)+ReLU.

    refs layout (batch dim squeezed away by the BlockSpecs):
      refs[0 : s*s]   : phase tensors of the zero-padded input, bf16
                        phase (a, b) = x_pad[a::s, b::s, :]
      refs[s*s + 0]   : folded conv1 weights, (9, Cin,  Cmid) bf16
      refs[s*s + 1]   : conv1 bias (folded BN1), (1, Cmid) f32
      refs[s*s + 2]   : folded conv2 weights, (9, Cmid, Cout) bf16
      refs[s*s + 3]   : conv2 bias (folded BN2 [+ shortcut BN]), (1, Cout) f32
      [next]          : folded 1x1 projection weights, (Cin, Cout) bf16 (proj)
      refs[-2]        : output tile, (Ho, Wo, Cout)
      refs[-1]        : VMEM scratch (Ho+2, Wo+2, Cmid) f32 -- padded y1
    """
    n_ph = stride * stride
    ph_refs = refs[:n_ph]
    w1_ref = refs[n_ph]
    b1_ref = refs[n_ph + 1]
    w2_ref = refs[n_ph + 2]
    b2_ref = refs[n_ph + 3]
    idx = n_ph + 4
    wres_ref = None
    if proj:
        wres_ref = refs[idx]
        idx += 1
    o_ref = refs[idx]
    y1p_ref = refs[idx + 1]

    cmid = w1_ref.shape[-1]
    cout = o_ref.shape[-1]

    # ---- Stage 1: conv3x3(stride) + BN1 + ReLU (9 accumulated MXU taps) ----
    acc1 = jnp.zeros((Ho * Wo, cmid), dtype=jnp.float32)
    for dh in range(3):
        for dw in range(3):
            ph = ph_refs[(dh % stride) * stride + (dw % stride)]
            win = ph[pl.ds(dh // stride, Ho), pl.ds(dw // stride, Wo), :]
            win = win.reshape(Ho * Wo, win.shape[-1])
            acc1 = acc1 + jnp.dot(win, w1_ref[dh * 3 + dw],
                                  preferred_element_type=jnp.float32)
    y1 = jnp.maximum(acc1 + b1_ref[...], 0.0)          # (Ho*Wo, Cmid) f32

    # Zero-halo padded stage-1 activation lives entirely in VMEM scratch
    # (re-zeroed every step -> safe under megacore grid sharding).
    y1p_ref[...] = jnp.zeros_like(y1p_ref)
    y1p_ref[pl.ds(1, Ho), pl.ds(1, Wo), :] = y1.reshape(Ho, Wo, cmid)

    # ---- Stage 2: conv3x3(1) + BN2 + residual + ReLU ----
    acc2 = jnp.zeros((Ho * Wo, cout), dtype=jnp.float32)
    for dh in range(3):
        for dw in range(3):
            win = y1p_ref[pl.ds(dh, Ho), pl.ds(dw, Wo), :]
            win = win.reshape(Ho * Wo, cmid).astype(jnp.bfloat16)
            acc2 = acc2 + jnp.dot(win, w2_ref[dh * 3 + dw],
                                  preferred_element_type=jnp.float32)
    y2 = acc2 + b2_ref[...]

    # Residual: reuse the already-resident input phase tiles.
    res_ph = ph_refs[(1 % stride) * stride + (1 % stride)]
    off = 1 // stride
    r = res_ph[pl.ds(off, Ho), pl.ds(off, Wo), :]
    r = r.reshape(Ho * Wo, r.shape[-1])
    if proj:                                            # fused 1x1 downsample + BN
        y2 = y2 + jnp.dot(r, wres_ref[...], preferred_element_type=jnp.float32)
    else:                                               # identity shortcut
        y2 = y2 + r.astype(jnp.float32)

    y2 = jnp.maximum(y2, 0.0)                           # final ReLU
    o_ref[...] = y2.reshape(Ho, Wo, cout).astype(o_ref.dtype)


def _basic_block_call(phases, w1_col, b1, w2_col, b2, wres, *, stride, out_hw,
                      out_dtype):
    """pallas_call wrapper: grid over batch, one image (+halo) per step."""
    n = phases[0].shape[0]
    ho, wo = out_hw
    cmid = w1_col.shape[-1]
    cout = w2_col.shape[-1]
    proj = wres is not None

    def img_spec(arr):
        return pl.BlockSpec((None,) + arr.shape[1:], lambda i: (i, 0, 0, 0))

    inputs = list(phases) + [
        w1_col, b1.reshape(1, cmid).astype(jnp.float32),
        w2_col, b2.reshape(1, cout).astype(jnp.float32),
    ]
    in_specs = [img_spec(p) for p in phases] + [
        pl.BlockSpec(w1_col.shape, lambda i: (0, 0, 0)),
        pl.BlockSpec((1, cmid), lambda i: (0, 0)),
        pl.BlockSpec(w2_col.shape, lambda i: (0, 0, 0)),
        pl.BlockSpec((1, cout), lambda i: (0, 0)),
    ]
    if proj:
        inputs.append(wres)
        in_specs.append(pl.BlockSpec(wres.shape, lambda i: (0, 0)))

    kernel = functools.partial(_basic_block_kernel, stride=stride,
                               Ho=ho, Wo=wo, proj=proj)
    return pl.pallas_call(
        kernel,
        grid=(n,),
        out_shape=jax.ShapeDtypeStruct((n, ho, wo, cout), out_dtype),
        in_specs=in_specs,
        out_specs=pl.BlockSpec((None, ho, wo, cout), lambda i: (i, 0, 0, 0)),
        scratch_shapes=[pltpu.VMEM((ho + 2, wo + 2, cmid), jnp.float32)],
        compiler_params=pltpu.CompilerParams(
            dimension_semantics=("parallel",)),         # megacore over images
    )(*inputs)


# ------------------------------ glue (JAX) --------------------------------- #

def fold_bn(gamma, beta, mean, var, eps=1e-5):
    scale = gamma / jnp.sqrt(var + eps)
    return scale, beta - mean * scale


def _split_phases(xp, stride):
    """Phase-split the padded NHWC input so in-kernel taps are contiguous."""
    if stride == 1:
        return [xp]
    return [xp[:, a::stride, b::stride, :]
            for a in range(stride) for b in range(stride)]


def _fold_conv3x3(w_oihw, scale):
    """PyTorch OIHW (Cout, Cin, 3, 3) -> (9, Cin, Cout) bf16 with BN scale folded."""
    cout, cin = w_oihw.shape[0], w_oihw.shape[1]
    return (jnp.transpose(w_oihw, (2, 3, 1, 0)) * scale).reshape(
        9, cin, cout).astype(jnp.bfloat16)


@functools.partial(jax.jit, static_argnums=2)
def basic_block_forward(x_nchw, params, stride):
    x = jnp.transpose(x_nchw, (0, 2, 3, 1))             # NCHW -> NHWC
    n, h, w, cin = x.shape
    ho = (h + 2 - 3) // stride + 1
    wo = (w + 2 - 3) // stride + 1

    s1, b1 = fold_bn(*params["bn1"])
    s2, b2 = fold_bn(*params["bn2"])

    # Pad once (bf16) and phase-split by the block stride; the phases feed
    # conv1 *and* the fused residual branch (no extra HBM materialization).
    xp = jnp.pad(x.astype(jnp.bfloat16), ((0, 0), (1, 1), (1, 1), (0, 0)))
    phases = _split_phases(xp, stride)

    w1_col = _fold_conv3x3(params["w1"], s1)
    w2_col = _fold_conv3x3(params["w2"], s2)

    if params["w_res"] is not None:                      # projection shortcut
        sr, br = fold_bn(*params["bn_res"])
        wres = (params["w_res"][:, :, 0, 0].T * sr).astype(jnp.bfloat16)
        b2 = b2 + br
    else:                                                # identity shortcut
        wres = None

    out = _basic_block_call(phases, w1_col, b1, w2_col, b2, wres,
                            stride=stride, out_hw=(ho, wo),
                            out_dtype=jnp.float32)
    return jnp.transpose(out, (0, 3, 1, 2))              # back to NCHW


# ------------------------- pure-JAX numerics check ------------------------- #

def _ref_forward(x_nchw, params, stride):
    """Reference with matching bf16-input / f32-accumulate numerics."""
    x = jnp.transpose(x_nchw, (0, 2, 3, 1))
    s1, b1 = fold_bn(*params["bn1"])
    s2, b2 = fold_bn(*params["bn2"])

    def conv(v, w_oihw, scale, s, pad):
        w = (jnp.transpose(w_oihw, (2, 3, 1, 0)) * scale).astype(jnp.bfloat16)
        return jax.lax.conv_general_dilated(
            v.astype(jnp.bfloat16), w, (s, s), ((pad, pad), (pad, pad)),
            dimension_numbers=("NHWC", "HWIO", "NHWC"),
            preferred_element_type=jnp.float32)

    y1 = jnp.maximum(conv(x, params["w1"], s1, stride, 1) + b1, 0.0).astype(jnp.bfloat16)
    y2 = conv(y1, params["w2"], s2, 1, 1) + b2
    if params["w_res"] is not None:
        sr, br = fold_bn(*params["bn_res"])
        res = conv(x, params["w_res"], sr, stride, 0) + br
    else:
        res = x.astype(jnp.bfloat16).astype(jnp.float32)
    out = jnp.maximum(y2 + res, 0.0)
    return jnp.transpose(out, (0, 3, 1, 2))


# --------------------------- deterministic params --------------------------- #

def init_params(key, in_channels, out_channels, stride):
    keys = jax.random.split(key, 6)

    def bn_params(k, c):
        k1, k2, k3, k4 = jax.random.split(k, 4)
        gamma = 0.5 + jax.random.uniform(k1, (c,), jnp.float32)
        beta = 0.1 * jax.random.normal(k2, (c,), jnp.float32)
        mean = 0.1 * jax.random.normal(k3, (c,), jnp.float32)
        var = 0.5 + jax.random.uniform(k4, (c,), jnp.float32)
        return (gamma, beta, mean, var)

    params = {
        "w1": 0.1 * jax.random.normal(keys[0], (out_channels, in_channels, 3, 3), jnp.float32),
        "bn1": bn_params(keys[1], out_channels),
        "w2": 0.1 * jax.random.normal(keys[2], (out_channels, out_channels, 3, 3), jnp.float32),
        "bn2": bn_params(keys[3], out_channels),
        "w_res": None,
        "bn_res": None,
    }
    if stride != 1 or in_channels != out_channels:       # expansion_factor == 1
        params["w_res"] = 0.1 * jax.random.normal(
            keys[4], (out_channels, in_channels, 1, 1), jnp.float32)
        params["bn_res"] = bn_params(keys[5], out_channels)
    return params


# ---------------------------------- main ------------------------------------ #

if __name__ == "__main__":
    key = jax.random.PRNGKey(0)
    kx1, kx2, kp1, kp2 = jax.random.split(key, 4)

    # Case 1: projection shortcut (stride=2, channel change), 16x16 -> 8x8.
    x1 = jax.random.normal(kx1, (2, 4, 16, 16), jnp.float32)
    p1 = init_params(kp1, 4, 8, 2)
    out1 = jax.block_until_ready(basic_block_forward(x1, p1, 2))
    ref1 = jax.block_until_ready(_ref_forward(x1, p1, 2))
    assert out1.shape == (2, 8, 8, 8), out1.shape
    assert bool(jnp.all(out1 >= 0.0))                    # final ReLU
    assert bool(jnp.allclose(out1, ref1, atol=2e-2, rtol=2e-2)), \
        float(jnp.max(jnp.abs(out1 - ref1)))

    # Case 2: identity shortcut (stride=1, same channels), 16x16 -> 16x16.
    x2 = jax.random.normal(kx2, (2, 8, 16, 16), jnp.float32)
    p2 = init_params(kp2, 8, 8, 1)
    out2 = jax.block_until_ready(basic_block_forward(x2, p2, 1))
    ref2 = jax.block_until_ready(_ref_forward(x2, p2, 1))
    assert out2.shape == (2, 8, 16, 16), out2.shape
    assert bool(jnp.all(out2 >= 0.0))
    assert bool(jnp.allclose(out2, ref2, atol=2e-2, rtol=2e-2)), \
        float(jnp.max(jnp.abs(out2 - ref2)))

    print("KERNEL_OK")
</pallas_src>

<mosaic_0001>
module attributes {stable_mosaic.version = 11 : i64} {
  func.func @_basic_block_kernel(%arg0: i32, %arg1: memref<1x9x9x4xbf16, #tpu.memory_space<vmem>>, %arg2: memref<1x9x9x4xbf16, #tpu.memory_space<vmem>>, %arg3: memref<1x9x9x4xbf16, #tpu.memory_space<vmem>>, %arg4: memref<1x9x9x4xbf16, #tpu.memory_space<vmem>>, %arg5: memref<9x4x8xbf16, #tpu.memory_space<vmem>>, %arg6: memref<1x8xf32, #tpu.memory_space<vmem>>, %arg7: memref<9x8x8xbf16, #tpu.memory_space<vmem>>, %arg8: memref<1x8xf32, #tpu.memory_space<vmem>>, %arg9: memref<4x8xbf16, #tpu.memory_space<vmem>>, %arg10: memref<1x8x8x8xf32, #tpu.memory_space<vmem>>, %arg11: memref<10x10x8xf32, #tpu.memory_space<vmem>>) attributes {dimension_semantics = [#tpu.dimension_semantics<parallel>], iteration_bounds = array<i64: 2>, scalar_prefetch = 0 : i64, scratch_operands = 1 : i64, tpu.core_type = #tpu.core_type<tc>, window_params = [{transform_indices = @transform_0, window_bounds = array<i64: 1, 9, 9, 4>}, {transform_indices = @transform_1, window_bounds = array<i64: 1, 9, 9, 4>}, {transform_indices = @transform_2, window_bounds = array<i64: 1, 9, 9, 4>}, {transform_indices = @transform_3, window_bounds = array<i64: 1, 9, 9, 4>}, {pipeline_mode = #tpu.pipeline_mode<synchronous>, transform_indices = @transform_4, window_bounds = array<i64: 9, 4, 8>}, {pipeline_mode = #tpu.pipeline_mode<synchronous>, transform_indices = @transform_5, window_bounds = array<i64: 1, 8>}, {pipeline_mode = #tpu.pipeline_mode<synchronous>, transform_indices = @transform_6, window_bounds = array<i64: 9, 8, 8>}, {pipeline_mode = #tpu.pipeline_mode<synchronous>, transform_indices = @transform_7, window_bounds = array<i64: 1, 8>}, {pipeline_mode = #tpu.pipeline_mode<synchronous>, transform_indices = @transform_8, window_bounds = array<i64: 4, 8>}, {transform_indices = @transform_9, window_bounds = array<i64: 1, 8, 8, 8>}]} {
    %cst = arith.constant 0.000000e+00 : f32
    %0 = vector.broadcast %cst : f32 to vector<64x8xf32>
    %c0 = arith.constant 0 : index
    %c0_0 = arith.constant 0 : index
    %c0_1 = arith.constant 0 : index
    %c0_2 = arith.constant 0 : index
    %1 = vector.load %arg1[%c0, %c0_0, %c0_1, %c0_2] : memref<1x9x9x4xbf16, #tpu.memory_space<vmem>>, vector<1x8x8x4xbf16>
    %2 = vector.shape_cast %1 : vector<1x8x8x4xbf16> to vector<8x8x4xbf16>
    %3 = vector.shape_cast %2 : vector<8x8x4xbf16> to vector<64x4xbf16>
    %c0_3 = arith.constant 0 : index
    %c0_4 = arith.constant 0 : index
    %c0_5 = arith.constant 0 : index
    %4 = vector.load %arg5[%c0_3, %c0_4, %c0_5] : memref<9x4x8xbf16, #tpu.memory_space<vmem>>, vector<1x4x8xbf16>
    %5 = vector.shape_cast %4 : vector<1x4x8xbf16> to vector<4x8xbf16>
    %cst_6 = arith.constant dense<0.000000e+00> : vector<64x8xf32>
    %6 = tpu.matmul %3, %5, %cst_6 {dimension_numbers = #tpu.dot_dimension_numbers<[1], [0], [0], [1], [0, 0, 1, 1], [], []>} : vector<64x4xbf16>, vector<4x8xbf16>, vector<64x8xf32> -> vector<64x8xf32>
    %7 = arith.addf %0, %6 : vector<64x8xf32>
    %c0_7 = arith.constant 0 : index
    %c0_8 = arith.constant 0 : index
    %c0_9 = arith.constant 0 : index
    %c0_10 = arith.constant 0 : index
    %8 = vector.load %arg2[%c0_7, %c0_8, %c0_9, %c0_10] : memref<1x9x9x4xbf16, #tpu.memory_space<vmem>>, vector<1x8x8x4xbf16>
    %9 = vector.shape_cast %8 : vector<1x8x8x4xbf16> to vector<8x8x4xbf16>
    %10 = vector.shape_cast %9 : vector<8x8x4xbf16> to vector<64x4xbf16>
    %c1 = arith.constant 1 : index
    %c0_11 = arith.constant 0 : index
    %c0_12 = arith.constant 0 : index
    %11 = vector.load %arg5[%c1, %c0_11, %c0_12] : memref<9x4x8xbf16, #tpu.memory_space<vmem>>, vector<1x4x8xbf16>
    %12 = vector.shape_cast %11 : vector<1x4x8xbf16> to vector<4x8xbf16>
    %cst_13 = arith.constant dense<0.000000e+00> : vector<64x8xf32>
    %13 = tpu.matmul %10, %12, %cst_13 {dimension_numbers = #tpu.dot_dimension_numbers<[1], [0], [0], [1], [0, 0, 1, 1], [], []>} : vector<64x4xbf16>, vector<4x8xbf16>, vector<64x8xf32> -> vector<64x8xf32>
    %14 = arith.addf %7, %13 : vector<64x8xf32>
    %c0_14 = arith.constant 0 : index
    %c0_15 = arith.constant 0 : index
    %c1_16 = arith.constant 1 : index
    %c0_17 = arith.constant 0 : index
    %15 = vector.load %arg1[%c0_14, %c0_15, %c1_16, %c0_17] : memref<1x9x9x4xbf16, #tpu.memory_space<vmem>>, vector<1x8x8x4xbf16>
    %16 = vector.shape_cast %15 : vector<1x8x8x4xbf16> to vector<8x8x4xbf16>
    %17 = vector.shape_cast %16 : vector<8x8x4xbf16> to vector<64x4xbf16>
    %c2 = arith.constant 2 : index
    %c0_18 = arith.constant 0 : index
    %c0_19 = arith.constant 0 : index
    %18 = vector.load %arg5[%c2, %c0_18, %c0_19] : memref<9x4x8xbf16, #tpu.memory_space<vmem>>, vector<1x4x8xbf16>
    %19 = vector.shape_cast %18 : vector<1x4x8xbf16> to vector<4x8xbf16>
    %cst_20 = arith.constant dense<0.000000e+00> : vector<64x8xf32>
    %20 = tpu.matmul %17, %19, %cst_20 {dimension_numbers = #tpu.dot_dimension_numbers<[1], [0], [0], [1], [0, 0, 1, 1], [], []>} : vector<64x4xbf16>, vector<4x8xbf16>, vector<64x8xf32> -> vector<64x8xf32>
    %21 = arith.addf %14, %20 : vector<64x8xf32>
    %c0_21 = arith.constant 0 : index
    %c0_22 = arith.constant 0 : index
    %c0_23 = arith.constant 0 : index
    %c0_24 = arith.constant 0 : index
    %22 = vector.load %arg3[%c0_21, %c0_22, %c0_23, %c0_24] : memref<1x9x9x4xbf16, #tpu.memory_space<vmem>>, vector<1x8x8x4xbf16>
    %23 = vector.shape_cast %22 : vector<1x8x8x4xbf16> to vector<8x8x4xbf16>
    %24 = vector.shape_cast %23 : vector<8x8x4xbf16> to vector<64x4xbf16>
    %c3 = arith.constant 3 : index
    %c0_25 = arith.constant 0 : index
    %c0_26 = arith.constant 0 : index
    %25 = vector.load %arg5[%c3, %c0_25, %c0_26] : memref<9x4x8xbf16, #tpu.memory_space<vmem>>, vector<1x4x8xbf16>
    %26 = vector.shape_cast %25 : vector<1x4x8xbf16> to vector<4x8xbf16>
    %cst_27 = arith.constant dense<0.000000e+00> : vector<64x8xf32>
    %27 = tpu.matmul %24, %26, %cst_27 {dimension_numbers = #tpu.dot_dimension_numbers<[1], [0], [0], [1], [0, 0, 1, 1], [], []>} : vector<64x4xbf16>, vector<4x8xbf16>, vector<64x8xf32> -> vector<64x8xf32>
    %28 = arith.addf %21, %27 : vector<64x8xf32>
    %c0_28 = arith.constant 0 : index
    %c0_29 = arith.constant 0 : index
    %c0_30 = arith.constant 0 : index
    %c0_31 = arith.constant 0 : index
    %29 = vector.load %arg4[%c0_28, %c0_29, %c0_30, %c0_31] : memref<1x9x9x4xbf16, #tpu.memory_space<vmem>>, vector<1x8x8x4xbf16>
    %30 = vector.shape_cast %29 : vector<1x8x8x4xbf16> to vector<8x8x4xbf16>
    %31 = vector.shape_cast %30 : vector<8x8x4xbf16> to vector<64x4xbf16>
    %c4 = arith.constant 4 : index
    %c0_32 = arith.constant 0 : index
    %c0_33 = arith.constant 0 : index
    %32 = vector.load %arg5[%c4, %c0_32, %c0_33] : memref<9x4x8xbf16, #tpu.memory_space<vmem>>, vector<1x4x8xbf16>
    %33 = vector.shape_cast %32 : vector<1x4x8xbf16> to vector<4x8xbf16>
    %cst_34 = arith.constant dense<0.000000e+00> : vector<64x8xf32>
    %34 = tpu.matmul %31, %33, %cst_34 {dimension_numbers = #tpu.dot_dimension_numbers<[1], [0], [0], [1], [0, 0, 1, 1], [], []>} : vector<64x4xbf16>, vector<4x8xbf16>, vector<64x8xf32> -> vector<64x8xf32>
    %35 = arith.addf %28, %34 : vector<64x8xf32>
    %c0_35 = arith.constant 0 : index
    %c0_36 = arith.constant 0 : index
    %c1_37 = arith.constant 1 : index
    %c0_38 = arith.constant 0 : index
    %36 = vector.load %arg3[%c0_35, %c0_36, %c1_37, %c0_38] : memref<1x9x9x4xbf16, #tpu.memory_space<vmem>>, vector<1x8x8x4xbf16>
    %37 = vector.shape_cast %36 : vector<1x8x8x4xbf16> to vector<8x8x4xbf16>
    %38 = vector.shape_cast %37 : vector<8x8x4xbf16> to vector<64x4xbf16>
    %c5 = arith.constant 5 : index
    %c0_39 = arith.constant 0 : index
    %c0_40 = arith.constant 0 : index
    %39 = vector.load %arg5[%c5, %c0_39, %c0_40] : memref<9x4x8xbf16, #tpu.memory_space<vmem>>, vector<1x4x8xbf16>
    %40 = vector.shape_cast %39 : vector<1x4x8xbf16> to vector<4x8xbf16>
    %cst_41 = arith.constant dense<0.000000e+00> : vector<64x8xf32>
    %41 = tpu.matmul %38, %40, %cst_41 {dimension_numbers = #tpu.dot_dimension_numbers<[1], [0], [0], [1], [0, 0, 1, 1], [], []>} : vector<64x4xbf16>, vector<4x8xbf16>, vector<64x8xf32> -> vector<64x8xf32>
    %42 = arith.addf %35, %41 : vector<64x8xf32>
    %c0_42 = arith.constant 0 : index
    %c1_43 = arith.constant 1 : index
    %c0_44 = arith.constant 0 : index
    %c0_45 = arith.constant 0 : index
    %43 = vector.load %arg1[%c0_42, %c1_43, %c0_44, %c0_45] : memref<1x9x9x4xbf16, #tpu.memory_space<vmem>>, vector<1x8x8x4xbf16>
    %44 = vector.shape_cast %43 : vector<1x8x8x4xbf16> to vector<8x8x4xbf16>
    %45 = vector.shape_cast %44 : vector<8x8x4xbf16> to vector<64x4xbf16>
    %c6 = arith.constant 6 : index
    %c0_46 = arith.constant 0 : index
    %c0_47 = arith.constant 0 : index
    %46 = vector.load %arg5[%c6, %c0_46, %c0_47] : memref<9x4x8xbf16, #tpu.memory_space<vmem>>, vector<1x4x8xbf16>
    %47 = vector.shape_cast %46 : vector<1x4x8xbf16> to vector<4x8xbf16>
    %cst_48 = arith.constant dense<0.000000e+00> : vector<64x8xf32>
    %48 = tpu.matmul %45, %47, %cst_48 {dimension_numbers = #tpu.dot_dimension_numbers<[1], [0], [0], [1], [0, 0, 1, 1], [], []>} : vector<64x4xbf16>, vector<4x8xbf16>, vector<64x8xf32> -> vector<64x8xf32>
    %49 = arith.addf %42, %48 : vector<64x8xf32>
    %c0_49 = arith.constant 0 : index
    %c1_50 = arith.constant 1 : index
    %c0_51 = arith.constant 0 : index
    %c0_52 = arith.constant 0 : index
    %50 = vector.load %arg2[%c0_49, %c1_50, %c0_51, %c0_52] : memref<1x9x9x4xbf16, #tpu.memory_space<vmem>>, vector<1x8x8x4xbf16>
    %51 = vector.shape_cast %50 : vector<1x8x8x4xbf16> to vector<8x8x4xbf16>
    %52 = vector.shape_cast %51 : vector<8x8x4xbf16> to vector<64x4xbf16>
    %c7 = arith.constant 7 : index
    %c0_53 = arith.constant 0 : index
    %c0_54 = arith.constant 0 : index
    %53 = vector.load %arg5[%c7, %c0_53, %c0_54] : memref<9x4x8xbf16, #tpu.memory_space<vmem>>, vector<1x4x8xbf16>
    %54 = vector.shape_cast %53 : vector<1x4x8xbf16> to vector<4x8xbf16>
    %cst_55 = arith.constant dense<0.000000e+00> : vector<64x8xf32>
    %55 = tpu.matmul %52, %54, %cst_55 {dimension_numbers = #tpu.dot_dimension_numbers<[1], [0], [0], [1], [0, 0, 1, 1], [], []>} : vector<64x4xbf16>, vector<4x8xbf16>, vector<64x8xf32> -> vector<64x8xf32>
    %56 = arith.addf %49, %55 : vector<64x8xf32>
    %c0_56 = arith.constant 0 : index
    %c1_57 = arith.constant 1 : index
    %c1_58 = arith.constant 1 : index
    %c0_59 = arith.constant 0 : index
    %57 = vector.load %arg1[%c0_56, %c1_57, %c1_58, %c0_59] : memref<1x9x9x4xbf16, #tpu.memory_space<vmem>>, vector<1x8x8x4xbf16>
    %58 = vector.shape_cast %57 : vector<1x8x8x4xbf16> to vector<8x8x4xbf16>
    %59 = vector.shape_cast %58 : vector<8x8x4xbf16> to vector<64x4xbf16>
    %c8 = arith.constant 8 : index
    %c0_60 = arith.constant 0 : index
    %c0_61 = arith.constant 0 : index
    %60 = vector.load %arg5[%c8, %c0_60, %c0_61] : memref<9x4x8xbf16, #tpu.memory_space<vmem>>, vector<1x4x8xbf16>
    %61 = vector.shape_cast %60 : vector<1x4x8xbf16> to vector<4x8xbf16>
    %cst_62 = arith.constant dense<0.000000e+00> : vector<64x8xf32>
    %62 = tpu.matmul %59, %61, %cst_62 {dimension_numbers = #tpu.dot_dimension_numbers<[1], [0], [0], [1], [0, 0, 1, 1], [], []>} : vector<64x4xbf16>, vector<4x8xbf16>, vector<64x8xf32> -> vector<64x8xf32>
    %63 = arith.addf %56, %62 : vector<64x8xf32>
    %c0_63 = arith.constant 0 : index
    %c0_64 = arith.constant 0 : index
    %64 = vector.load %arg6[%c0_63, %c0_64] : memref<1x8xf32, #tpu.memory_space<vmem>>, vector<1x8xf32>
    %65 = vector.broadcast %64 : vector<1x8xf32> to vector<64x8xf32>
    %66 = arith.addf %63, %65 : vector<64x8xf32>
    %cst_65 = arith.constant 0.000000e+00 : f32
    %67 = vector.broadcast %cst_65 : f32 to vector<64x8xf32>
    %68 = arith.maximumf %66, %67 : vector<64x8xf32>
    %cst_66 = arith.constant 0.000000e+00 : f32
    %69 = vector.broadcast %cst_66 : f32 to vector<10x10x8xf32>
    %c0_67 = arith.constant 0 : index
    %c0_68 = arith.constant 0 : index
    %c0_69 = arith.constant 0 : index
    %70 = vector.load %arg11[%c0_67, %c0_68, %c0_69] : memref<10x10x8xf32, #tpu.memory_space<vmem>>, vector<10x10x8xf32>
    tpu.vector_store %arg11[%c0_67, %c0_68, %c0_69], %69 {strides = array<i32>} : memref<10x10x8xf32, #tpu.memory_space<vmem>>, vector<10x10x8xf32>,
    %71 = vector.shape_cast %68 : vector<64x8xf32> to vector<8x8x8xf32>
    %c1_70 = arith.constant 1 : index
    %c1_71 = arith.constant 1 : index
    %c0_72 = arith.constant 0 : index
    %72 = vector.load %arg11[%c1_70, %c1_71, %c0_72] : memref<10x10x8xf32, #tpu.memory_space<vmem>>, vector<8x8x8xf32>
    tpu.vector_store %arg11[%c1_70, %c1_71, %c0_72], %71 {strides = array<i32>} : memref<10x10x8xf32, #tpu.memory_space<vmem>>, vector<8x8x8xf32>,
    %cst_73 = arith.constant 0.000000e+00 : f32
    %73 = vector.broadcast %cst_73 : f32 to vector<64x8xf32>
    %c0_74 = arith.constant 0 : index
    %c0_75 = arith.constant 0 : index
    %c0_76 = arith.constant 0 : index
    %74 = vector.load %arg11[%c0_74, %c0_75, %c0_76] : memref<10x10x8xf32, #tpu.memory_space<vmem>>, vector<8x8x8xf32>
    %75 = vector.shape_cast %74 : vector<8x8x8xf32> to vector<64x8xf32>
    %76 = arith.truncf %75 : vector<64x8xf32> to vector<64x8xbf16>
    %c0_77 = arith.constant 0 : index
    %c0_78 = arith.constant 0 : index
    %c0_79 = arith.constant 0 : index
    %77 = vector.load %arg7[%c0_77, %c0_78, %c0_79] : memref<9x8x8xbf16, #tpu.memory_space<vmem>>, vector<1x8x8xbf16>
    %78 = vector.shape_cast %77 : vector<1x8x8xbf16> to vector<8x8xbf16>
    %cst_80 = arith.constant dense<0.000000e+00> : vector<64x8xf32>
    %79 = tpu.matmul %76, %78, %cst_80 {dimension_numbers = #tpu.dot_dimension_numbers<[1], [0], [0], [1], [0, 0, 1, 1], [], []>} : vector<64x8xbf16>, vector<8x8xbf16>, vector<64x8xf32> -> vector<64x8xf32>
    %80 = arith.addf %73, %79 : vector<64x8xf32>
    %c0_81 = arith.constant 0 : index
    %c1_82 = arith.constant 1 : index
    %c0_83 = arith.constant 0 : index
    %81 = vector.load %arg11[%c0_81, %c1_82, %c0_83] : memref<10x10x8xf32, #tpu.memory_space<vmem>>, vector<8x8x8xf32>
    %82 = vector.shape_cast %81 : vector<8x8x8xf32> to vector<64x8xf32>
    %83 = arith.truncf %82 : vector<64x8xf32> to vector<64x8xbf16>
    %c1_84 = arith.constant 1 : index
    %c0_85 = arith.constant 0 : index
    %c0_86 = arith.constant 0 : index
    %84 = vector.load %arg7[%c1_84, %c0_85, %c0_86] : memref<9x8x8xbf16, #tpu.memory_space<vmem>>, vector<1x8x8xbf16>
    %85 = vector.shape_cast %84 : vector<1x8x8xbf16> to vector<8x8xbf16>
    %cst_87 = arith.constant dense<0.000000e+00> : vector<64x8xf32>
    %86 = tpu.matmul %83, %85, %cst_87 {dimension_numbers = #tpu.dot_dimension_numbers<[1], [0], [0], [1], [0, 0, 1, 1], [], []>} : vector<64x8xbf16>, vector<8x8xbf16>, vector<64x8xf32> -> vector<64x8xf32>
    %87 = arith.addf %80, %86 : vector<64x8xf32>
    %c0_88 = arith.constant 0 : index
    %c2_89 = arith.constant 2 : index
    %c0_90 = arith.constant 0 : index
    %88 = vector.load %arg11[%c0_88, %c2_89, %c0_90] : memref<10x10x8xf32, #tpu.memory_space<vmem>>, vector<8x8x8xf32>
    %89 = vector.shape_cast %88 : vector<8x8x8xf32> to vector<64x8xf32>
    %90 = arith.truncf %89 : vector<64x8xf32> to vector<64x8xbf16>
    %c2_91 = arith.constant 2 : index
    %c0_92 = arith.constant 0 : index
    %c0_93 = arith.constant 0 : index
    %91 = vector.load %arg7[%c2_91, %c0_92, %c0_93] : memref<9x8x8xbf16, #tpu.memory_space<vmem>>, vector<1x8x8xbf16>
    %92 = vector.shape_cast %91 : vector<1x8x8xbf16> to vector<8x8xbf16>
    %cst_94 = arith.constant dense<0.000000e+00> : vector<64x8xf32>
    %93 = tpu.matmul %90, %92, %cst_94 {dimension_numbers = #tpu.dot_dimension_numbers<[1], [0], [0], [1], [0, 0, 1, 1], [], []>} : vector<64x8xbf16>, vector<8x8xbf16>, vector<64x8xf32> -> vector<64x8xf32>
    %94 = arith.addf %87, %93 : vector<64x8xf32>
    %c1_95 = arith.constant 1 : index
    %c0_96 = arith.constant 0 : index
    %c0_97 = arith.constant 0 : index
    %95 = vector.load %arg11[%c1_95, %c0_96, %c0_97] : memref<10x10x8xf32, #tpu.memory_space<vmem>>, vector<8x8x8xf32>
    %96 = vector.shape_cast %95 : vector<8x8x8xf32> to vector<64x8xf32>
    %97 = arith.truncf %96 : vector<64x8xf32> to vector<64x8xbf16>
    %c3_98 = arith.constant 3 : index
    %c0_99 = arith.constant 0 : index
    %c0_100 = arith.constant 0 : index
    %98 = vector.load %arg7[%c3_98, %c0_99, %c0_100] : memref<9x8x8xbf16, #tpu.memory_space<vmem>>, vector<1x8x8xbf16>
    %99 = vector.shape_cast %98 : vector<1x8x8xbf16> to vector<8x8xbf16>
    %cst_101 = arith.constant dense<0.000000e+00> : vector<64x8xf32>
    %100 = tpu.matmul %97, %99, %cst_101 {dimension_numbers = #tpu.dot_dimension_numbers<[1], [0], [0], [1], [0, 0, 1, 1], [], []>} : vector<64x8xbf16>, vector<8x8xbf16>, vector<64x8xf32> -> vector<64x8xf32>
    %101 = arith.addf %94, %100 : vector<64x8xf32>
    %c1_102 = arith.constant 1 : index
    %c1_103 = arith.constant 1 : index
    %c0_104 = arith.constant 0 : index
    %102 = vector.load %arg11[%c1_102, %c1_103, %c0_104] : memref<10x10x8xf32, #tpu.memory_space<vmem>>, vector<8x8x8xf32>
    %103 = vector.shape_cast %102 : vector<8x8x8xf32> to vector<64x8xf32>
    %104 = arith.truncf %103 : vector<64x8xf32> to vector<64x8xbf16>
    %c4_105 = arith.constant 4 : index
    %c0_106 = arith.constant 0 : index
    %c0_107 = arith.constant 0 : index
    %105 = vector.load %arg7[%c4_105, %c0_106, %c0_107] : memref<9x8x8xbf16, #tpu.memory_space<vmem>>, vector<1x8x8xbf16>
    %106 = vector.shape_cast %105 : vector<1x8x8xbf16> to vector<8x8xbf16>
    %cst_108 = arith.constant dense<0.000000e+00> : vector<64x8xf32>
    %107 = tpu.matmul %104, %106, %cst_108 {dimension_numbers = #tpu.dot_dimension_numbers<[1], [0], [0], [1], [0, 0, 1, 1], [], []>} : vector<64x8xbf16>, vector<8x8xbf16>, vector<64x8xf32> -> vector<64x8xf32>
    %108 = arith.addf %101, %107 : vector<64x8xf32>
    %c1_109 = arith.constant 1 : index
    %c2_110 = arith.constant 2 : index
    %c0_111 = arith.constant 0 : index
    %109 = vector.load %arg11[%c1_109, %c2_110, %c0_111] : memref<10x10x8xf32, #tpu.memory_space<vmem>>, vector<8x8x8xf32>
    %110 = vector.shape_cast %109 : vector<8x8x8xf32> to vector<64x8xf32>
    %111 = arith.truncf %110 : vector<64x8xf32> to vector<64x8xbf16>
    %c5_112 = arith.constant 5 : index
    %c0_113 = arith.constant 0 : index
    %c0_114 = arith.constant 0 : index
    %112 = vector.load %arg7[%c5_112, %c0_113, %c0_114] : memref<9x8x8xbf16, #tpu.memory_space<vmem>>, vector<1x8x8xbf16>
    %113 = vector.shape_cast %112 : vector<1x8x8xbf16> to vector<8x8xbf16>
    %cst_115 = arith.constant dense<0.000000e+00> : vector<64x8xf32>
    %114 = tpu.matmul %111, %113, %cst_115 {dimension_numbers = #tpu.dot_dimension_numbers<[1], [0], [0], [1], [0, 0, 1, 1], [], []>} : vector<64x8xbf16>, vector<8x8xbf16>, vector<64x8xf32> -> vector<64x8xf32>
    %115 = arith.addf %108, %114 : vector<64x8xf32>
    %c2_116 = arith.constant 2 : index
    %c0_117 = arith.constant 0 : index
    %c0_118 = arith.constant 0 : index
    %116 = vector.load %arg11[%c2_116, %c0_117, %c0_118] : memref<10x10x8xf32, #tpu.memory_space<vmem>>, vector<8x8x8xf32>
    %117 = vector.shape_cast %116 : vector<8x8x8xf32> to vector<64x8xf32>
    %118 = arith.truncf %117 : vector<64x8xf32> to vector<64x8xbf16>
    %c6_119 = arith.constant 6 : index
    %c0_120 = arith.constant 0 : index
    %c0_121 = arith.constant 0 : index
    %119 = vector.load %arg7[%c6_119, %c0_120, %c0_121] : memref<9x8x8xbf16, #tpu.memory_space<vmem>>, vector<1x8x8xbf16>
    %120 = vector.shape_cast %119 : vector<1x8x8xbf16> to vector<8x8xbf16>
    %cst_122 = arith.constant dense<0.000000e+00> : vector<64x8xf32>
    %121 = tpu.matmul %118, %120, %cst_122 {dimension_numbers = #tpu.dot_dimension_numbers<[1], [0], [0], [1], [0, 0, 1, 1], [], []>} : vector<64x8xbf16>, vector<8x8xbf16>, vector<64x8xf32> -> vector<64x8xf32>
    %122 = arith.addf %115, %121 : vector<64x8xf32>
    %c2_123 = arith.constant 2 : index
    %c1_124 = arith.constant 1 : index
    %c0_125 = arith.constant 0 : index
    %123 = vector.load %arg11[%c2_123, %c1_124, %c0_125] : memref<10x10x8xf32, #tpu.memory_space<vmem>>, vector<8x8x8xf32>
    %124 = vector.shape_cast %123 : vector<8x8x8xf32> to vector<64x8xf32>
    %125 = arith.truncf %124 : vector<64x8xf32> to vector<64x8xbf16>
    %c7_126 = arith.constant 7 : index
    %c0_127 = arith.constant 0 : index
    %c0_128 = arith.constant 0 : index
    %126 = vector.load %arg7[%c7_126, %c0_127, %c0_128] : memref<9x8x8xbf16, #tpu.memory_space<vmem>>, vector<1x8x8xbf16>
    %127 = vector.shape_cast %126 : vector<1x8x8xbf16> to vector<8x8xbf16>
    %cst_129 = arith.constant dense<0.000000e+00> : vector<64x8xf32>
    %128 = tpu.matmul %125, %127, %cst_129 {dimension_numbers = #tpu.dot_dimension_numbers<[1], [0], [0], [1], [0, 0, 1, 1], [], []>} : vector<64x8xbf16>, vector<8x8xbf16>, vector<64x8xf32> -> vector<64x8xf32>
    %129 = arith.addf %122, %128 : vector<64x8xf32>
    %c2_130 = arith.constant 2 : index
    %c2_131 = arith.constant 2 : index
    %c0_132 = arith.constant 0 : index
    %130 = vector.load %arg11[%c2_130, %c2_131, %c0_132] : memref<10x10x8xf32, #tpu.memory_space<vmem>>, vector<8x8x8xf32>
    %131 = vector.shape_cast %130 : vector<8x8x8xf32> to vector<64x8xf32>
    %132 = arith.truncf %131 : vector<64x8xf32> to vector<64x8xbf16>
    %c8_133 = arith.constant 8 : index
    %c0_134 = arith.constant 0 : index
    %c0_135 = arith.constant 0 : index
    %133 = vector.load %arg7[%c8_133, %c0_134, %c0_135] : memref<9x8x8xbf16, #tpu.memory_space<vmem>>, vector<1x8x8xbf16>
    %134 = vector.shape_cast %133 : vector<1x8x8xbf16> to vector<8x8xbf16>
    %cst_136 = arith.constant dense<0.000000e+00> : vector<64x8xf32>
    %135 = tpu.matmul %132, %134, %cst_136 {dimension_numbers = #tpu.dot_dimension_numbers<[1], [0], [0], [1], [0, 0, 1, 1], [], []>} : vector<64x8xbf16>, vector<8x8xbf16>, vector<64x8xf32> -> vector<64x8xf32>
    %136 = arith.addf %129, %135 : vector<64x8xf32>
    %c0_137 = arith.constant 0 : index
    %c0_138 = arith.constant 0 : index
    %137 = vector.load %arg8[%c0_137, %c0_138] : memref<1x8xf32, #tpu.memory_space<vmem>>, vector<1x8xf32>
    %138 = vector.broadcast %137 : vector<1x8xf32> to vector<64x8xf32>
    %139 = arith.addf %136, %138 : vector<64x8xf32>
    %c0_139 = arith.constant 0 : index
    %c0_140 = arith.constant 0 : index
    %c0_141 = arith.constant 0 : index
    %c0_142 = arith.constant 0 : index
    %140 = vector.load %arg4[%c0_139, %c0_140, %c0_141, %c0_142] : memref<1x9x9x4xbf16, #tpu.memory_space<vmem>>, vector<1x8x8x4xbf16>
    %141 = vector.shape_cast %140 : vector<1x8x8x4xbf16> to vector<8x8x4xbf16>
    %142 = vector.shape_cast %141 : vector<8x8x4xbf16> to vector<64x4xbf16>
    %c0_143 = arith.constant 0 : index
    %c0_144 = arith.constant 0 : index
    %143 = vector.load %arg9[%c0_143, %c0_144] : memref<4x8xbf16, #tpu.memory_space<vmem>>, vector<4x8xbf16>
    %cst_145 = arith.constant dense<0.000000e+00> : vector<64x8xf32>
    %144 = tpu.matmul %142, %143, %cst_145 {dimension_numbers = #tpu.dot_dimension_numbers<[1], [0], [0], [1], [0, 0, 1, 1], [], []>} : vector<64x4xbf16>, vector<4x8xbf16>, vector<64x8xf32> -> vector<64x8xf32>
    %145 = arith.addf %139, %144 : vector<64x8xf32>
    %cst_146 = arith.constant 0.000000e+00 : f32
    %146 = vector.broadcast %cst_146 : f32 to vector<64x8xf32>
    %147 = arith.maximumf %145, %146 : vector<64x8xf32>
    %148 = vector.shape_cast %147 : vector<64x8xf32> to vector<8x8x8xf32>
    %c0_147 = arith.constant 0 : index
    %c0_148 = arith.constant 0 : index
    %c0_149 = arith.constant 0 : index
    %c0_150 = arith.constant 0 : index
    %149 = vector.load %arg10[%c0_147, %c0_148, %c0_149, %c0_150] : memref<1x8x8x8xf32, #tpu.memory_space<vmem>>, vector<1x8x8x8xf32>
    %150 = vector.shape_cast %149 : vector<1x8x8x8xf32> to vector<8x8x8xf32>
    %151 = vector.shape_cast %148 : vector<8x8x8xf32> to vector<1x8x8x8xf32>
    tpu.vector_store %arg10[%c0_147, %c0_148, %c0_149, %c0_150], %151 {strides = array<i32>} : memref<1x8x8x8xf32, #tpu.memory_space<vmem>>, vector<1x8x8x8xf32>,
    return
  }
  func.func @transform_0(%arg0: i32) -> (i32, i32, i32, i32) {
    %c0_i32 = arith.constant 0 : i32
    %c0_i32_0 = arith.constant 0 : i32
    %c0_i32_1 = arith.constant 0 : i32
    %c0_i32_2 = arith.constant 0 : i32
    return %arg0, %c0_i32, %c0_i32_0, %c0_i32_1 : i32, i32, i32, i32
  }
  func.func @transform_1(%arg0: i32) -> (i32, i32, i32, i32) {
    %c0_i32 = arith.constant 0 : i32
    %c0_i32_0 = arith.constant 0 : i32
    %c0_i32_1 = arith.constant 0 : i32
    %c0_i32_2 = arith.constant 0 : i32
    return %arg0, %c0_i32, %c0_i32_0, %c0_i32_1 : i32, i32, i32, i32
  }
  func.func @transform_2(%arg0: i32) -> (i32, i32, i32, i32) {
    %c0_i32 = arith.constant 0 : i32
    %c0_i32_0 = arith.constant 0 : i32
    %c0_i32_1 = arith.constant 0 : i32
    %c0_i32_2 = arith.constant 0 : i32
    return %arg0, %c0_i32, %c0_i32_0, %c0_i32_1 : i32, i32, i32, i32
  }
  func.func @transform_3(%arg0: i32) -> (i32, i32, i32, i32) {
    %c0_i32 = arith.constant 0 : i32
    %c0_i32_0 = arith.constant 0 : i32
    %c0_i32_1 = arith.constant 0 : i32
    %c0_i32_2 = arith.constant 0 : i32
    return %arg0, %c0_i32, %c0_i32_0, %c0_i32_1 : i32, i32, i32, i32
  }
  func.func @transform_4(%arg0: i32) -> (i32, i32, i32) {
    %c0_i32 = arith.constant 0 : i32
    %c0_i32_0 = arith.constant 0 : i32
    %c0_i32_1 = arith.constant 0 : i32
    %c0_i32_2 = arith.constant 0 : i32
    return %c0_i32, %c0_i32_0, %c0_i32_1 : i32, i32, i32
  }
  func.func @transform_5(%arg0: i32) -> (i32, i32) {
    %c0_i32 = arith.constant 0 : i32
    %c0_i32_0 = arith.constant 0 : i32
    %c0_i32_1 = arith.constant 0 : i32
    return %c0_i32, %c0_i32_0 : i32, i32
  }
  func.func @transform_6(%arg0: i32) -> (i32, i32, i32) {
    %c0_i32 = arith.constant 0 : i32
    %c0_i32_0 = arith.constant 0 : i32
    %c0_i32_1 = arith.constant 0 : i32
    %c0_i32_2 = arith.constant 0 : i32
    return %c0_i32, %c0_i32_0, %c0_i32_1 : i32, i32, i32
  }
  func.func @transform_7(%arg0: i32) -> (i32, i32) {
    %c0_i32 = arith.constant 0 : i32
    %c0_i32_0 = arith.constant 0 : i32
    %c0_i32_1 = arith.constant 0 : i32
    return %c0_i32, %c0_i32_0 : i32, i32
  }
  func.func @transform_8(%arg0: i32) -> (i32, i32) {
    %c0_i32 = arith.constant 0 : i32
    %c0_i32_0 = arith.constant 0 : i32
    %c0_i32_1 = arith.constant 0 : i32
    return %c0_i32, %c0_i32_0 : i32, i32
  }
  func.func @transform_9(%arg0: i32) -> (i32, i32, i32, i32) {
    %c0_i32 = arith.constant 0 : i32
    %c0_i32_0 = arith.constant 0 : i32
    %c0_i32_1 = arith.constant 0 : i32
    %c0_i32_2 = arith.constant 0 : i32
    return %arg0, %c0_i32, %c0_i32_0, %c0_i32_1 : i32, i32, i32, i32
  }
}

</mosaic_0001>

<bundles_post_ra>
// kernel: basic_block_forward.1
= control target key start
LH: loop header
LB: loop body
LE: loop exit
PB: predicated region body
PF: predicated region fallthrough
CT: control target
= control target key end

     0   :  { %s2640_s30 = smov 0   ;;  %s3301_s0 = inlined_call_operand.vmem [shape: bf16[2,9,9,4], index: 0, kind: input, shape index: {}]   ;;  %s3302_s1 = inlined_call_operand.vmem [shape: bf16[2,9,9,4], index: 1, kind: input, shape index: {}]   ;;  %s3303_s2 = inlined_call_operand.vmem [shape: bf16[2,9,9,4], index: 2, kind: input, shape index: {}]   ;;  %s3304_s3 = inlined_call_operand.vmem [shape: bf16[2,9,9,4], index: 3, kind: input, shape index: {}]   ;;  %s3305_s4 = inlined_call_operand.vmem [shape: bf16[9,4,8], index: 4, kind: input, shape index: {}]   ;;  %s3306_s5 = inlined_call_operand.vmem [shape: f32[1,8], index: 5, kind: input, shape index: {}]   ;;  %s3307_s6 = inlined_call_operand.vmem [shape: bf16[9,8,8], index: 6, kind: input, shape index: {}]   ;;  %s3308_s7 = inlined_call_operand.vmem [shape: f32[1,8], index: 7, kind: input, shape index: {}]   ;;  %s3309_s8 = inlined_call_operand.vmem [shape: bf16[4,8], index: 8, kind: input, shape index: {}]   ;;  %s3310_s9 = inlined_call_operand.vmem [shape: f32[2,8,8,8], index: 9, kind: output, shape index: {}]  }
   0x1 LB: > { %s2288_s10 = sadd.s32 4294967295, %s2587_s30   ;;  %p2292_p0 = scmp.ge.s32.totalorder %s2587_s30, 1  ;;  %s2587_s30 = sphi %s2640_s30, %s19_s30  }
   0x2   : > { %p317_p1 = scmp.lt.s32.totalorder %s2587_s30, 3 }
   0x4   : > { %p318_p2 = pnand %p2292_p0, %p317_p1 }
   0x5   : > { %p368_p3 = scmp.lt.s32.totalorder (!%p318_p2), %s2288_s10, 1 }
   0x6   : > { %321 = sbr.rel (%p318_p2) target bundleno = 604 (0x25c), region = 56 }
   0xb   : > { %v2299_v0 = vld [vmem:[%s3305_s4 + $0x2] sm:$0x3]  ;;  %vm446_vm0 = vcmask 1041408   ;;  %v2345_v2 = vld [vmem:[%s3305_s4 + $0x6] sm:$0x3]  ;;  %s3314_s10 = smov (!%p368_p3, %s2288_s10), 1 }
   0xc   : > { %v448_v1 = vsel %vm446_vm0, %v2299_v0, 0  ;;  %v402_v3 = vld [vmem:[%s3305_s4] sm:$0x3]  ;;  %v783_v4 = vsel %vm446_vm0, %v2345_v2, 0  ;;  %v2340_v6 = vld [vmem:[%s3305_s4 + $0x4] sm:$0x3] }
   0xd   : > { %457 = vmatpush.bf16.msra.mxu0 %v448_v1  ;;  %2566 = vmatpush.bf16.msra.mxu3 %v448_v1  ;;  %v512_v5 = vsel %vm446_vm0, %v402_v3, 0  ;;  %v701_v7 = vsel %vm446_vm0, %v2340_v6, 0  ;;  %s2667_s19 = smul.u32 72, %s3314_s10  ;;  %vm433_vm1 = vcmask 31744   ;;  %vm559_vm2 = vsmask.f32 3328 }
   0xe   : > { %2567 = vmatpush.bf16.msra.mxu1 %v512_v5  ;;  %2568 = vmatpush.bf16.msra.mxu2 %v701_v7  ;;  %vm560_vm3 = vsmask.f32 7440  ;;  %vm1548_vm5 = vcmask 1043456   ;;  %vm1478_vm6 = vcmask 64512   ;;  %vm1480_vm7 = vcmask 58368   ;;  %s2537_s28 = sshll.u32 %s3314_s10, 6 }
   0xf   : > { %s2673_s22 = scalar_lea.vmem %s3301_s0, %s2667_s19  ;;  %s2679_s25 = scalar_lea.vmem %s3302_s1, %s2667_s19  ;;  %vm2696_vm4 = vmor %vm559_vm2, %vm560_vm3 }
  0x10   : > { %v2302_v8 = vld [vmem:[%s2679_s25] sm:$0xf]  ;;  %v2542_v9 = vld [vmem:[%s2679_s25 + $0x4] sm:$0xf0]  ;;  %v2306_v10 = vld [vmem:[%s2679_s25 + $0x10] sm:$0xf]  ;;  %s2730_s11 = scalar_lea.vmem %s3303_s2, %s2667_s19  ;;  %s2780_s24 = scalar_lea.vmem %s3304_s3, %s2667_s19 }
  0x11   : > { %792 = vmatpush.bf16.msrb.mxu3 %v783_v4  ;;  %521 = vmatpush.bf16.msrb.mxu0 %v512_v5  ;;  %v2303_v11 = vor.u32 %v2542_v9, %v2302_v8  ;;  %v2543_v12 = vld [vmem:[%s2679_s25 + $0x14] sm:$0xf0]  ;;  %v2326_v13 = vld [vmem:[%s2673_s22 + $0x10] sm:$0xf]  ;;  %v548_v18 = vld [vmem:[%s2673_s22 + $0x14] sm:$0x1]  ;;  %s3253_s12 = scalar_lea.vmem %s3310_s9, %s2537_s28 }
  0x12   : > { %v2539_v14 = vld [vmem:[%s2673_s22 + $0x14] sm:$0xf0]  ;;  %v2307_v15 = vor.u32 %v2543_v12, %v2306_v10  ;;  %v547_v17 = vld [vmem:[%s2673_s22 + $0x10] sm:$0xf]  ;;  %v550_v20 = vld [vmem:[%s2673_s22 + $0x1c] sm:$0x1] }
  0x13   : > { %v2327_v16 = vor.u32 %v2539_v14, %v2326_v13  ;;  %v549_v19 = vld [vmem:[%s2673_s22 + $0x18] sm:$0xf]  ;;  %2316 = vmatmul.msk.bf16.vlgmr.msra.gmra.mxu0 %vm433_vm1, %v2303_v11  ;;  %v591_v21 = vshrl.u32 %v547_v17, 16  ;;  %v594_v22 = vshll.u32 %v547_v17, 16  ;;  %v600_v23 = vshll.u32 %v548_v18, 16 }
  0x14   : > { %v605_v24 = vshrl.u32 %v549_v19, 16  ;;  %2317 = vmatmul.msk.bf16.vlgmr.msra.gmra.mxu3 %vm433_vm1, %v2307_v15  ;;  %v608_v25 = vshll.u32 %v549_v19, 16  ;;  %v614_v26 = vshll.u32 %v550_v20, 16  ;;  %v2310_v33 = vld [vmem:[%s2679_s25 + $0x20] sm:$0xf] }
  0x15   : > { %2337 = vmatmul.msk.bf16.vlgmr.msra.gmra.mxu1 %vm433_vm1, %v2327_v16  ;;  %v593_v27 = vrot.slane %v591_v21, 4  ;;  %v596_v28 = vrot.slane %v594_v22, 5  ;;  %710 = vmatpush.bf16.msra.mxu0 %v701_v7  ;;  %v602_v32 = vrot.slane %v600_v23, 5  ;;  %v551_v34 = vld [vmem:[%s2673_s22 + $0x20] sm:$0xf] }
  0x16   : > { %v607_v29 = vrot.slane %v605_v24, 4  ;;  %v610_v30 = vrot.slane %v608_v25, 5  ;;  %v616_v37 = vrot.slane %v614_v26, 5  ;;  %v553_v38 = vld [vmem:[%s2673_s22 + $0x28] sm:$0xf]  ;;  %v619_v39 = vshrl.u32 %v551_v34, 16 }
  0x17   : > { %v597_v31 = vor.u32 %v596_v28, %v593_v27  ;;  %v622_v40 = vshll.u32 %v551_v34, 16  ;;  %v2544_v42 = vld [vmem:[%s2679_s25 + $0x24] sm:$0xf0]  ;;  %v633_v43 = vshrl.u32 %v553_v38, 16  ;;  %v636_v44 = vshll.u32 %v553_v38, 16 }
  0x18   : > { %v611_v36 = vor.u32 %v610_v30, %v607_v29  ;;  %v2322_v46 = vld [vmem:[%s2673_s22] sm:$0xf]  ;;  %v552_v47 = vld [vmem:[%s2673_s22 + $0x24] sm:$0x1]  ;;  %v621_v48 = vrot.slane %v619_v39, 4  ;;  %v2311_v57 = vor.u32 %v2544_v42, %v2310_v33 }
  0x19   : > { %v598_v41 = vrot.slane %v597_v31, 4  ;;  %v624_v49 = vrot.slane %v622_v40, 5  ;;  %v554_v51 = vld [vmem:[%s2673_s22 + $0x2c] sm:$0x1]  ;;  %v635_v52 = vrot.slane %v633_v43, 4  ;;  %v638_v53 = vrot.slane %v636_v44, 5 }
  0x1a   : > { %v612_v45 = vrot.slane %v611_v36, 4  ;;  %v543_v54 = vld [vmem:[%s2673_s22] sm:$0xf]  ;;  %v2538_v58 = vld [vmem:[%s2673_s22 + $0x4] sm:$0xf0]  ;;  %v628_v0 = vshll.u32 %v552_v47, 16 }
  0x1b   : > { %v603_v50 = vsel %vm2696_vm4, %v598_v41, %v602_v32  ;;  %v2330_v59 = vld [vmem:[%s2673_s22 + $0x20] sm:$0xf]  ;;  %v545_v60 = vld [vmem:[%s2673_s22 + $0x8] sm:$0xf]  ;;  %v625_v63 = vor.u32 %v624_v49, %v621_v48  ;;  %v544_v1 = vld [vmem:[%s2673_s22 + $0x4] sm:$0x1]  ;;  %v639_v3 = vor.u32 %v638_v53, %v635_v52  ;;  %v2323_v9 = vor.u32 %v2538_v58, %v2322_v46 }
  0x1c   : > { %v617_v55 = vsel %vm2696_vm4, %v612_v45, %v616_v37  ;;  %v678_v56 = vunpack.c.l.b16 %v603_v50  ;;  %v2540_v62 = vld [vmem:[%s2673_s22 + $0x24] sm:$0xf0]  ;;  %v563_v2 = vshrl.u32 %v543_v54, 16  ;;  %v642_v4 = vshll.u32 %v554_v51, 16  ;;  %v546_v5 = vld [vmem:[%s2673_s22 + $0xc] sm:$0x1] }
  0x1d   : > { %v679_v61 = vunpack.c.l.b16 %v617_v55  ;;  %v566_v6 = vshll.u32 %v543_v54, 16  ;;  %v577_v7 = vshrl.u32 %v545_v60, 16  ;;  %v580_v11 = vshll.u32 %v545_v60, 16  ;;  %v2366_v12 = vld [vmem:[%s3305_s4 + $0x8] sm:$0x3] }
  0x1e   : > { %v565_v10 = vrot.slane %v563_v2, 4  ;;  %v2331_v13 = vor.u32 %v2540_v62, %v2330_v59  ;;  %v572_v15 = vshll.u32 %v544_v1, 16  ;;  %v626_v17 = vrot.slane %v625_v63, 4  ;;  %v555_v25 = vld [vmem:[%s2673_s22 + $0x30] sm:$0xf] }
  0x1f   : > { %v685_v8 = vpack.c.b16 %v679_v61, %v678_v56  ;;  %v568_v14 = vrot.slane %v566_v6, 5  ;;  %v579_v16 = vrot.slane %v577_v7, 4  ;;  %v630_v18 = vrot.slane %v628_v0, 5  ;;  %v557_v27 = vld [vmem:[%s2673_s22 + $0x38] sm:$0xf] }
  0x20   : > { %v582_v19 = vrot.slane %v580_v11, 5  ;;  %v586_v20 = vshll.u32 %v546_v5, 16  ;;  %v640_v21 = vrot.slane %v639_v3, 4  ;;  %v644_v22 = vrot.slane %v642_v4, 5  ;;  %v2429_v39 = vld [vmem:[%s3305_s4 + $0xe] sm:$0x3] }
  0x21   : > { %2342 = vmatmul.msk.bf16.vlgmr.msra.gmra.mxu2 %vm433_vm1, %v685_v8  ;;  %v569_v23 = vor.u32 %v568_v14, %v565_v10  ;;  %v865_v24 = vsel %vm446_vm0, %v2366_v12, 0  ;;  %v574_v29 = vrot.slane %v572_v15, 5  ;;  %v631_v31 = vsel %vm2696_vm4, %v626_v17, %v630_v18  ;;  %v2387_v40 = vld [vmem:[%s3305_s4 + $0xa] sm:$0x3]  ;;  %v2400_v41 = vld [vmem:[%s3305_s4 + $0xc] sm:$0x3] }
  0x22   : > { %v583_v26 = vor.u32 %v582_v19, %v579_v16  ;;  %v588_v30 = vrot.slane %v586_v20, 5  ;;  %v647_v33 = vshrl.u32 %v555_v25, 16  ;;  %v645_v34 = vsel %vm2696_vm4, %v640_v21, %v644_v22  ;;  %v556_v45 = vld [vmem:[%s2673_s22 + $0x34] sm:$0x1]  ;;  %v904_v46 = vld [vmem:[%s2730_s11] sm:$0xf] }
  0x23   : > { %2336 = vmatmul.msk.bf16.vlgmr.msrb.gmra.mxu0 %vm433_vm1, %v2323_v9  ;;  %v570_v28 = vrot.slane %v569_v23, 4  ;;  %v650_v36 = vshll.u32 %v555_v25, 16  ;;  %v661_v37 = vshrl.u32 %v557_v27, 16  ;;  %v664_v38 = vshll.u32 %v557_v27, 16  ;;  %v558_v48 = vld [vmem:[%s2673_s22 + $0x3c] sm:$0x1] }
  0x24   : > { %2318 = vmatmul.msk.bf16.gmra.mxu3 %vm433_vm1, %v2311_v57  ;;  %v584_v32 = vrot.slane %v583_v26, 4  ;;  %874 = vmatpush.bf16.msrb.mxu0 %v865_v24  ;;  %v680_v42 = vunpack.c.l.b16 %v631_v31  ;;  %v681_v47 = vunpack.c.l.b16 %v645_v34  ;;  %v649_v49 = vrot.slane %v647_v33, 4  ;;  %v906_v56 = vld [vmem:[%s2730_s11 + $0x8] sm:$0xf]  ;;  %v2314_v57 = vld [vmem:[%s2679_s25 + $0x30] sm:$0xf] }
  0x25   : > { %2338 = vmatmul.msk.bf16.gmra.mxu1 %vm433_vm1, %v2331_v13  ;;  %v575_v43 = vsel %vm2696_vm4, %v570_v28, %v574_v29  ;;  %v1225_v50 = vsel %vm446_vm0, %v2429_v39, 0  ;;  %v1059_v51 = vsel %vm446_vm0, %v2387_v40, 0  ;;  %v652_v52 = vrot.slane %v650_v36, 5  ;;  %v2545_v58 = vld [vmem:[%s2679_s25 + $0x34] sm:$0xf0] }
  0x26   : > { %v589_v44 = vsel %vm2696_vm4, %v584_v32, %v588_v30  ;;  %v663_v53 = vrot.slane %v661_v37, 4  ;;  %v666_v54 = vrot.slane %v664_v38, 5  ;;  %1234 = vmatpush.bf16.msra.mxu3 %v1225_v50  ;;  %1068 = vmatpush.bf16.msrb.mxu1 %v1059_v51  ;;  %v1142_v55 = vsel %vm446_vm0, %v2400_v41, 0  ;;  %v2334_v63 = vld [vmem:[%s2673_s22 + $0x30] sm:$0xf] }
  0x27   : > { %v676_v59 = vunpack.c.l.b16 %v575_v43  ;;  %v677_v60 = vunpack.c.l.b16 %v589_v44  ;;  %1151 = vmatpush.bf16.msrb.mxu2 %v1142_v55  ;;  %v921_v61 = vshrl.u32 %v904_v46, 16  ;;  %v924_v62 = vshll.u32 %v904_v46, 16  ;;  %v2541_v4 = vld [vmem:[%s2673_s22 + $0x34] sm:$0xf0]  ;;  %v905_v10 = vld [vmem:[%s2730_s11 + $0x4] sm:$0x1] }
  0x28   : > { %v656_v0 = vshll.u32 %v556_v45, 16  ;;  %v935_v1 = vshrl.u32 %v906_v56, 16  ;;  %v938_v2 = vshll.u32 %v906_v56, 16  ;;  %v686_v3 = vpack.c.b16 %v681_v47, %v680_v42  ;;  %v907_v11 = vld [vmem:[%s2730_s11 + $0xc] sm:$0x1] }
  0x29   : > { %v670_v5 = vshll.u32 %v558_v48, 16  ;;  %v923_v6 = vrot.slane %v921_v61, 4  ;;  %v926_v7 = vrot.slane %v924_v62, 5  ;;  %v653_v8 = vor.u32 %v652_v52, %v649_v49  ;;  %v2466_v15 = vld [vmem:[%s3305_s4 + $0x10] sm:$0x3] }
  0x2a   : > { %v667_v9 = vor.u32 %v666_v54, %v663_v53  ;;  %v937_v12 = vrot.slane %v935_v1, 4  ;;  %v940_v13 = vrot.slane %v938_v2, 5  ;;  %v684_v14 = vpack.c.b16 %v677_v60, %v676_v59  ;;  %v908_v27 = vld [vmem:[%s2730_s11 + $0x10] sm:$0xf]  ;;  %v910_v28 = vld [vmem:[%s2730_s11 + $0x18] sm:$0xf] }
  0x2b   : > { %v2315_v16 = vor.u32 %v2545_v58, %v2314_v57  ;;  %v2335_v17 = vor.u32 %v2541_v4, %v2334_v63  ;;  %v658_v18 = vrot.slane %v656_v0, 5  ;;  %v927_v19 = vor.u32 %v926_v7, %v923_v6  ;;  %v2369_v44 = vld [vmem:[%s2780_s24] sm:$0xf]  ;;  %v2550_v45 = vld [vmem:[%s2780_s24 + $0x4] sm:$0xf0] }
  0x2c   : > { %v930_v20 = vshll.u32 %v905_v10, 16  ;;  %v941_v21 = vor.u32 %v940_v13, %v937_v12  ;;  %v944_v22 = vshll.u32 %v907_v11, 16  ;;  %v654_v23 = vrot.slane %v653_v8, 4  ;;  %v909_v52 = vld [vmem:[%s2730_s11 + $0x14] sm:$0x1] }
  0x2d   : > { %v668_v24 = vrot.slane %v667_v9, 4  ;;  %v672_v25 = vrot.slane %v670_v5, 5  ;;  %v1419_v26 = vsel %vm446_vm0, %v2466_v15, 0  ;;  %v928_v29 = vrot.slane %v927_v19, 4  ;;  %v911_v53 = vld [vmem:[%s2730_s11 + $0x1c] sm:$0x1] }
  0x2e   : > { %v932_v30 = vrot.slane %v930_v20, 5  ;;  %v942_v31 = vrot.slane %v941_v21, 4  ;;  %v946_v32 = vrot.slane %v944_v22, 5  ;;  %v659_v33 = vsel %vm2696_vm4, %v654_v23, %v658_v18  ;;  %v2348_v55 = vld [vmem:[%s2730_s11] sm:$0xf] }
  0x2f   : > { %v673_v34 = vsel %vm2696_vm4, %v668_v24, %v672_v25  ;;  %v949_v36 = vshrl.u32 %v908_v27, 16  ;;  %v952_v37 = vshll.u32 %v908_v27, 16  ;;  %v963_v38 = vshrl.u32 %v910_v28, 16  ;;  %v2546_v56 = vld [vmem:[%s2730_s11 + $0x4] sm:$0xf0] }
  0x30   : > { %v966_v39 = vshll.u32 %v910_v28, 16  ;;  %v682_v40 = vunpack.c.l.b16 %v659_v33  ;;  %v683_v41 = vunpack.c.l.b16 %v673_v34  ;;  %v933_v42 = vsel %vm2696_vm4, %v928_v29, %v932_v30  ;;  %v912_v4 = vld [vmem:[%s2730_s11 + $0x20] sm:$0xf]  ;;  %v914_v5 = vld [vmem:[%s2730_s11 + $0x28] sm:$0xf] }
  0x31   : > { %2343 = vmatmul.msk.bf16.gmra.mxu2 %vm433_vm1, %v686_v3  ;;  %v947_v43 = vsel %vm2696_vm4, %v942_v31, %v946_v32  ;;  %v951_v46 = vrot.slane %v949_v36, 4  ;;  %v954_v47 = vrot.slane %v952_v37, 5  ;;  %v965_v48 = vrot.slane %v963_v38, 4  ;;  %v2403_v12 = vld [vmem:[%s2673_s22 + $0x8] sm:$0xf] }
  0x32   : > { %v968_v49 = vrot.slane %v966_v39, 5  ;;  %v1034_v50 = vunpack.c.l.b16 %v933_v42  ;;  %v1035_v51 = vunpack.c.l.b16 %v947_v43  ;;  %v687_v54 = vpack.c.b16 %v683_v41, %v682_v40  ;;  %v2554_v13 = vld [vmem:[%s2673_s22 + $0xc] sm:$0xf0]  ;;  %v2547_v15 = vld [vmem:[%s2730_s11 + $0x14] sm:$0xf0] }
  0x33   : > { %2341 = vmatmul.msk.bf16.vlgmr.msra.gmra.mxu0 %vm433_vm1, %v684_v14  ;;  %v2370_v57 = vor.u32 %v2550_v45, %v2369_v44  ;;  %v955_v58 = vor.u32 %v954_v47, %v951_v46  ;;  %v958_v59 = vshll.u32 %v909_v52, 16  ;;  %v972_v61 = vshll.u32 %v911_v53, 16  ;;  %v2352_v14 = vld [vmem:[%s2730_s11 + $0x10] sm:$0xf]  ;;  %v2551_v19 = vld [vmem:[%s2780_s24 + $0x14] sm:$0xf0] }
  0x34   : > { %2319 = vmatmul.msk.bf16.gmra.mxu3 %vm433_vm1, %v2315_v16  ;;  %1428 = vmatpush.bf16.msra.mxu0 %v1419_v26  ;;  %v969_v60 = vor.u32 %v968_v49, %v965_v48  ;;  %v2349_v62 = vor.u32 %v2546_v56, %v2348_v55  ;;  %v1042_v63 = vpack.c.b16 %v1035_v51, %v1034_v50  ;;  %v977_v8 = vshrl.u32 %v912_v4, 16  ;;  %v2373_v16 = vld [vmem:[%s2780_s24 + $0x10] sm:$0xf]  ;;  %v913_v25 = vld [vmem:[%s2730_s11 + $0x24] sm:$0x1] }
  0x35   : > { %2339 = vmatmul.msk.bf16.gmra.mxu1 %vm433_vm1, %v2335_v17  ;;  %v956_v0 = vrot.slane %v955_v58, 4  ;;  %v960_v1 = vrot.slane %v958_v59, 5  ;;  %v974_v3 = vrot.slane %v972_v61, 5  ;;  %v980_v9 = vshll.u32 %v912_v4, 16  ;;  %v915_v26 = vld [vmem:[%s2730_s11 + $0x2c] sm:$0x1] }
  0x36   : > { %v970_v2 = vrot.slane %v969_v60, 4  ;;  %v991_v10 = vshrl.u32 %v914_v5, 16  ;;  %v994_v11 = vshll.u32 %v914_v5, 16  ;;  %v979_v20 = vrot.slane %v977_v8, 4  ;;  %v916_v39 = vld [vmem:[%s2730_s11 + $0x30] sm:$0xf] }
  0x37   : > { %v961_v6 = vsel %vm2696_vm4, %v956_v0, %v960_v1  ;;  %v982_v21 = vrot.slane %v980_v9, 5  ;;  %v2404_v24 = vor.u32 %v2554_v13, %v2403_v12  ;;  %v2353_v27 = vor.u32 %v2547_v15, %v2352_v14  ;;  %v918_v40 = vld [vmem:[%s2730_s11 + $0x38] sm:$0xf]  ;;  %v2555_v44 = vld [vmem:[%s2673_s22 + $0x1c] sm:$0xf0] }
  0x38   : > { %v975_v7 = vsel %vm2696_vm4, %v970_v2, %v974_v3  ;;  %v1036_v17 = vunpack.c.l.b16 %v961_v6  ;;  %v993_v22 = vrot.slane %v991_v10, 4  ;;  %v996_v23 = vrot.slane %v994_v11, 5  ;;  %v2407_v41 = vld [vmem:[%s2673_s22 + $0x18] sm:$0xf]  ;;  %v2356_v50 = vld [vmem:[%s2730_s11 + $0x20] sm:$0xf] }
  0x39   : > { %v1037_v18 = vunpack.c.l.b16 %v975_v7  ;;  %v2374_v28 = vor.u32 %v2551_v19, %v2373_v16  ;;  %v983_v30 = vor.u32 %v982_v21, %v979_v20  ;;  %v986_v31 = vshll.u32 %v913_v25, 16  ;;  %v2377_v51 = vld [vmem:[%s2780_s24 + $0x20] sm:$0xf]  ;;  %v2552_v52 = vld [vmem:[%s2780_s24 + $0x24] sm:$0xf0] }
  0x3a   : > { %v997_v32 = vor.u32 %v996_v23, %v993_v22  ;;  %v1000_v33 = vshll.u32 %v915_v26, 16  ;;  %v1005_v45 = vshrl.u32 %v916_v39, 16  ;;  %v1008_v46 = vshll.u32 %v916_v39, 16  ;;  %v2548_v55 = vld [vmem:[%s2730_s11 + $0x24] sm:$0xf0] }
  0x3b   : > { %v1043_v29 = vpack.c.b16 %v1037_v18, %v1036_v17  ;;  %v984_v34 = vrot.slane %v983_v30, 4  ;;  %v988_v36 = vrot.slane %v986_v31, 5  ;;  %v1019_v47 = vshrl.u32 %v918_v40, 16  ;;  %v917_v60 = vld [vmem:[%s2730_s11 + $0x34] sm:$0x1] }
  0x3c   : > { %v998_v37 = vrot.slane %v997_v32, 4  ;;  %v1002_v38 = vrot.slane %v1000_v33, 5  ;;  %v1022_v48 = vshll.u32 %v918_v40, 16  ;;  %v2408_v49 = vor.u32 %v2555_v44, %v2407_v41  ;;  %v919_v61 = vld [vmem:[%s2730_s11 + $0x3c] sm:$0x1] }
  0x3d   : > { %v989_v42 = vsel %vm2696_vm4, %v984_v34, %v988_v36  ;;  %v1007_v56 = vrot.slane %v1005_v45, 4  ;;  %v1021_v58 = vrot.slane %v1019_v47, 4  ;;  %v1014_v2 = vshll.u32 %v917_v60, 16  ;;  %v2450_v5 = vld [vmem:[%s2673_s22 + $0x8] sm:$0xf] }
  0x3e   : > { %v1003_v43 = vsel %vm2696_vm4, %v998_v37, %v1002_v38  ;;  %v1038_v53 = vunpack.c.l.b16 %v989_v42  ;;  %v1024_v59 = vrot.slane %v1022_v48, 5  ;;  %v1028_v4 = vshll.u32 %v919_v61, 16  ;;  %v2452_v10 = vld [vmem:[%s2673_s22 + $0x10] sm:$0xf]  ;;  %v2411_v17 = vld [vmem:[%s2673_s22 + $0x28] sm:$0xf] }
  0x3f   : > { %v1016_v7 = vrot.slane %v1014_v2, 5  ;;  %v1281_v11 = vshrl.u32 %v2450_v5, 16  ;;  %v1284_v12 = vshll.u32 %v2450_v5, 16  ;;  %v1295_v13 = vshrl.u32 %v2452_v10, 16  ;;  %v2556_v18 = vld [vmem:[%s2673_s22 + $0x2c] sm:$0xf0] }
  0x40   : > { %v1025_v3 = vor.u32 %v1024_v59, %v1021_v58  ;;  %v1030_v9 = vrot.slane %v1028_v4, 5  ;;  %v1298_v14 = vshll.u32 %v2452_v10, 16  ;;  %v2360_v19 = vld [vmem:[%s2730_s11 + $0x30] sm:$0xf]  ;;  %v2549_v20 = vld [vmem:[%s2730_s11 + $0x34] sm:$0xf0] }
  0x41   : > { %2344 = vmatmul.msk.bf16.gmra.mxu2 %vm433_vm1, %v687_v54  ;;  %v1039_v54 = vunpack.c.l.b16 %v1003_v43  ;;  %v1283_v21 = vrot.slane %v1281_v11, 4  ;;  %v1286_v22 = vrot.slane %v1284_v12, 5  ;;  %v2381_v23 = vld [vmem:[%s2780_s24 + $0x30] sm:$0xf]  ;;  %v2451_v30 = vld [vmem:[%s2673_s22 + $0xc] sm:$0x1]  ;;  %v2361_v32 = vor.u32 %v2549_v20, %v2360_v19 }
  0x42   : > { %v1026_v8 = vrot.slane %v1025_v3, 4  ;;  %v2453_v31 = vld [vmem:[%s2673_s22 + $0x14] sm:$0x1]  ;;  %v1290_v37 = vshll.u32 %v2451_v30, 16  ;;  %v2454_v40 = vld [vmem:[%s2673_s22 + $0x18] sm:$0xf] }
  0x43   : > { %2383 = vmatmul.msk.bf16.vlgmr.msrb.gmra.mxu0 %vm433_vm1, %v2370_v57  ;;  %v1010_v57 = vrot.slane %v1008_v46, 5  ;;  %v1044_v0 = vpack.c.b16 %v1039_v54, %v1038_v53  ;;  %v1287_v34 = vor.u32 %v1286_v22, %v1283_v21  ;;  %v1304_v39 = vshll.u32 %v2453_v31, 16  ;;  %v2456_v41 = vld [vmem:[%s2673_s22 + $0x20] sm:$0xf]  ;;  %v2455_v60 = vld [vmem:[%s2673_s22 + $0x1c] sm:$0x1] }
  0x44   : > { %2362 = vmatmul.msk.bf16.vlgmr.msrb.gmra.mxu3 %vm433_vm1, %v2349_v62  ;;  %v2378_v62 = vor.u32 %v2552_v52, %v2377_v51  ;;  %v1031_v16 = vsel %vm2696_vm4, %v1026_v8, %v1030_v9  ;;  %v1292_v43 = vrot.slane %v1290_v37, 5  ;;  %v1309_v46 = vshrl.u32 %v2454_v40, 16  ;;  %v2415_v52 = vld [vmem:[%s2673_s22 + $0x38] sm:$0xf]  ;;  %v2557_v53 = vld [vmem:[%s2673_s22 + $0x3c] sm:$0xf0] }
  0x45   : > { %2388 = vmatmul.msk.bf16.vlgmr.msrb.gmra.mxu1 %vm433_vm1, %v1042_v63  ;;  %v2357_v63 = vor.u32 %v2548_v55, %v2356_v50  ;;  %v1011_v1 = vor.u32 %v1010_v57, %v1007_v56  ;;  %v1041_v26 = vunpack.c.l.b16 %v1031_v16  ;;  %v1288_v42 = vrot.slane %v1287_v34, 4  ;;  %v2457_v61 = vld [vmem:[%s2673_s22 + $0x24] sm:$0x1]  ;;  %v2458_v11 = vld [vmem:[%s2673_s22 + $0x28] sm:$0xf] }
  0x46   : > { %v1306_v45 = vrot.slane %v1304_v39, 5  ;;  %v1312_v47 = vshll.u32 %v2454_v40, 16  ;;  %v1323_v48 = vshrl.u32 %v2456_v41, 16  ;;  %v1311_v54 = vrot.slane %v1309_v46, 4  ;;  %v2460_v12 = vld [vmem:[%s2673_s22 + $0x30] sm:$0xf] }
  0x47   : > { %v1012_v6 = vrot.slane %v1011_v1, 4  ;;  %v1293_v50 = vsel %vm2696_vm4, %v1288_v42, %v1292_v43  ;;  %v1318_v2 = vshll.u32 %v2455_v60, 16  ;;  %v1332_v4 = vshll.u32 %v2457_v61, 16  ;;  %v2464_v42 = vld [vmem:[%s2673_s22 + $0x40] sm:$0xf] }
  0x48   : > { %v1314_v55 = vrot.slane %v1312_v47, 5  ;;  %v1325_v56 = vrot.slane %v1323_v48, 4  ;;  %v1394_v58 = vunpack.c.l.b16 %v1293_v50  ;;  %v1340_v16 = vshll.u32 %v2458_v11, 16  ;;  %v2465_v60 = vld [vmem:[%s2673_s22 + $0x44] sm:$0x1] }
  0x49   : > { %v1017_v15 = vsel %vm2696_vm4, %v1012_v6, %v1016_v7  ;;  %v1320_v8 = vrot.slane %v1318_v2, 5  ;;  %v1334_v10 = vrot.slane %v1332_v4, 5  ;;  %v1382_v50 = vshll.u32 %v2464_v42, 16 }
  0x4a   : > { %v1040_v25 = vunpack.c.l.b16 %v1017_v15  ;;  %v1315_v1 = vor.u32 %v1314_v55, %v1311_v54  ;;  %v1337_v15 = vshrl.u32 %v2458_v11, 16  ;;  %v1342_v22 = vrot.slane %v1340_v16, 5  ;;  %v2560_v54 = vld [vmem:[%s2679_s25 + $0x2c] sm:$0xf0]  ;;  %v2444_v16 = vld [vmem:[%s2679_s25 + $0x38] sm:$0xf] }
  0x4b   : > { %v1388_v4 = vshll.u32 %v2465_v60, 16 }
  0x4c   : > { %v1045_v36 = vpack.c.b16 %v1041_v26, %v1040_v25  ;;  %v1316_v7 = vrot.slane %v1315_v1, 4  ;;  %v1339_v21 = vrot.slane %v1337_v15, 4  ;;  %v2459_v25 = vld [vmem:[%s2673_s22 + $0x2c] sm:$0x1]  ;;  %v2461_v26 = vld [vmem:[%s2673_s22 + $0x34] sm:$0x1] }
  0x4d   : > { %v1346_v31 = vshll.u32 %v2459_v25, 16 }
  0x4e   : > { %v1343_v30 = vor.u32 %v1342_v22, %v1339_v21 }
  0x50   : > { %v1344_v37 = vrot.slane %v1343_v30, 4 }
  0x51   : > { %2417 = vmatmul.msk.bf16.vlgmr.msrb.gmra.mxu2 %vm433_vm1, %v2404_v24  ;;  %v2553_v24 = vld [vmem:[%s2780_s24 + $0x34] sm:$0xf0] }
  0x52   : > { %v2382_v33 = vor.u32 %v2553_v24, %v2381_v23 }
  0x53   : > { %2384 = vmatmul.msk.bf16.gmra.mxu0 %vm433_vm1, %v2374_v28  ;;  %v1300_v28 = vrot.slane %v1298_v14, 5 }
  0x54   : > { %2363 = vmatmul.msk.bf16.gmra.mxu3 %vm433_vm1, %v2353_v27  ;;  %v1297_v27 = vrot.slane %v1295_v13, 4  ;;  %v1321_v13 = vsel %vm2696_vm4, %v1316_v7, %v1320_v8 }
  0x55   : > { %2389 = vmatmul.msk.bf16.gmra.mxu1 %vm433_vm1, %v1043_v29  ;;  %v2412_v29 = vor.u32 %v2556_v18, %v2411_v17  ;;  %v1351_v17 = vshrl.u32 %v2460_v12, 16  ;;  %v1354_v18 = vshll.u32 %v2460_v12, 16  ;;  %v1396_v19 = vunpack.c.l.b16 %v1321_v13 }
  0x56   : > { %v1301_v38 = vor.u32 %v1300_v28, %v1297_v27  ;;  %v2436_v27 = vld [vmem:[%s2679_s25 + $0x18] sm:$0xf]  ;;  %v2559_v28 = vld [vmem:[%s2679_s25 + $0x1c] sm:$0xf0] }
  0x57   : > { %v1353_v23 = vrot.slane %v1351_v17, 4  ;;  %v1356_v24 = vrot.slane %v1354_v18, 5  ;;  %v2561_v17 = vld [vmem:[%s2679_s25 + $0x3c] sm:$0xf0] }
  0x58   : > { %v1302_v44 = vrot.slane %v1301_v38, 4  ;;  %v1348_v38 = vrot.slane %v1346_v31, 5  ;;  %v2445_v21 = vor.u32 %v2561_v17, %v2444_v16 }
  0x5a   : > { %v1307_v51 = vsel %vm2696_vm4, %v1302_v44, %v1306_v45  ;;  %v1349_v44 = vsel %vm2696_vm4, %v1344_v37, %v1348_v38 }
  0x5b   : > { %v1395_v59 = vunpack.c.l.b16 %v1307_v51  ;;  %v2440_v51 = vld [vmem:[%s2679_s25 + $0x28] sm:$0xf] }
  0x5d   : > { %v1402_v5 = vpack.c.b16 %v1395_v59, %v1394_v58  ;;  %v1384_v58 = vrot.slane %v1382_v50, 5  ;;  %v2463_v59 = vld [vmem:[%s2673_s22 + $0x3c] sm:$0x1] }
  0x5e   : > { %v1374_v2 = vshll.u32 %v2463_v59, 16 }
  0x60   : > { %v1376_v7 = vrot.slane %v1374_v2, 5 }
  0x61   : > { %2418 = vmatmul.msk.bf16.gmra.mxu2 %vm433_vm1, %v2408_v49  ;;  %v1326_v49 = vshll.u32 %v2456_v41, 16  ;;  %v2462_v41 = vld [vmem:[%s2673_s22 + $0x38] sm:$0xf] }
  0x62   : > { %v1365_v47 = vshrl.u32 %v2462_v41, 16  ;;  %v1368_v48 = vshll.u32 %v2462_v41, 16 }
  0x63   : > { %2385 = vmatmul.msk.bf16.gmra.mxu0 %vm433_vm1, %v2378_v62  ;;  %v1328_v57 = vrot.slane %v1326_v49, 5  ;;  %v2416_v62 = vor.u32 %v2557_v53, %v2415_v52  ;;  %v1379_v49 = vshrl.u32 %v2464_v42, 16  ;;  %v1398_v52 = vunpack.c.l.b16 %v1349_v44 }
  0x64   : > { %2364 = vmatmul.msk.bf16.gmra.mxu3 %vm433_vm1, %v2357_v63  ;;  %v2432_v63 = vld [vmem:[%s2679_s25 + $0x8] sm:$0xf]  ;;  %v1367_v55 = vrot.slane %v1365_v47, 4 }
  0x65   : > { %2390 = vmatmul.msk.bf16.gmra.mxu1 %vm433_vm1, %v1044_v0  ;;  %v2558_v0 = vld [vmem:[%s2679_s25 + $0xc] sm:$0xf0]  ;;  %v1329_v3 = vor.u32 %v1328_v57, %v1325_v56  ;;  %v1370_v56 = vrot.slane %v1368_v48, 5  ;;  %v1381_v57 = vrot.slane %v1379_v49, 4 }
  0x66   : > { %v2433_v6 = vor.u32 %v2558_v0, %v2432_v63 }
  0x67   : > { %v1330_v9 = vrot.slane %v1329_v3, 4  ;;  %v1371_v1 = vor.u32 %v1370_v56, %v1367_v55  ;;  %v1385_v3 = vor.u32 %v1384_v58, %v1381_v57  ;;  %v2589_v56 = vmov 0.0  }
  0x68   : > { %1482 = vst.msk [vmem:[#allocation2 + $0x10] sm:$0xff] %vm1478_vm6, %v2589_v56 }
  0x69   : > { %v1335_v14 = vsel %vm2696_vm4, %v1330_v9, %v1334_v10  ;;  %v1386_v8 = vrot.slane %v1385_v3, 4  ;;  %v1390_v9 = vrot.slane %v1388_v4, 5  ;;  %1483 = vst.msk [vmem:[#allocation2 + $0x18] sm:$0x3] %vm1480_vm7, %v2589_v56 }
  0x6a   : > { %v1397_v20 = vunpack.c.l.b16 %v1335_v14  ;;  %1479 = vst.msk [vmem:[#allocation2] sm:$0xff] %vm1478_vm6, %v2589_v56 }
  0x6b   : > { %v1391_v13 = vsel %vm2696_vm4, %v1386_v8, %v1390_v9  ;;  %1481 = vst.msk [vmem:[#allocation2 + $0x8] sm:$0x3] %vm1480_vm7, %v2589_v56 }
  0x6c   : > { %v1401_v15 = vunpack.c.l.b16 %v1391_v13  ;;  %1484 = vst.msk [vmem:[#allocation2 + $0x20] sm:$0xff] %vm1478_vm6, %v2589_v56 }
  0x6d   : > { %1485 = vst.msk [vmem:[#allocation2 + $0x28] sm:$0x3] %vm1480_vm7, %v2589_v56 }
  0x6e   : > { %1486 = vst.msk [vmem:[#allocation2 + $0x30] sm:$0xff] %vm1478_vm6, %v2589_v56 }
  0x6f   : > { %1487 = vst.msk [vmem:[#allocation2 + $0x38] sm:$0x3] %vm1480_vm7, %v2589_v56 }
  0x70   : > { %1488 = vst.msk [vmem:[#allocation2 + $0x40] sm:$0xff] %vm1478_vm6, %v2589_v56 }
  0x71   : > { %2419 = vmatmul.msk.bf16.gmra.mxu2 %vm433_vm1, %v2412_v29  ;;  %v1403_v29 = vpack.c.b16 %v1397_v20, %v1396_v19  ;;  %1489 = vst.msk [vmem:[#allocation2 + $0x48] sm:$0x3] %vm1480_vm7, %v2589_v56 }
  0x72   : > { %1490 = vst.msk [vmem:[#allocation2 + $0x50] sm:$0xff] %vm1478_vm6, %v2589_v56 }
  0x73   : > { %2386 = vmatmul.msk.bf16.gmra.mxu0 %vm433_vm1, %v2382_v33  ;;  %v1360_v33 = vshll.u32 %v2461_v26, 16  ;;  %v1521_v26 = vld [vmem:[%s3307_s6] sm:$0xf]  ;;  %1491 = vst.msk [vmem:[#allocation2 + $0x58] sm:$0x3] %vm1480_vm7, %v2589_v56 }
  0x74   : > { %2365 = vmatmul.msk.bf16.gmra.mxu3 %vm433_vm1, %v2361_v32  ;;  %v1357_v32 = vor.u32 %v1356_v24, %v1353_v23  ;;  %1492 = vst.msk [vmem:[#allocation2 + $0x60] sm:$0xff] %vm1478_vm6, %v2589_v56 }
  0x75   : > { %2391 = vmatmul.msk.bf16.gmra.mxu1 %vm433_vm1, %v1045_v36  ;;  %v2437_v36 = vor.u32 %v2559_v28, %v2436_v27  ;;  %v1362_v40 = vrot.slane %v1360_v33, 5  ;;  %v2471_v27 = vld [vmem:[%s3307_s6 + $0x4] sm:$0xf]  ;;  %v1594_v28 = vsel %vm1548_vm5, %v1521_v26, 0  ;;  %1493 = vst.msk [vmem:[#allocation2 + $0x68] sm:$0x3] %vm1480_vm7, %v2589_v56 }
  0x76   : > { %v1358_v39 = vrot.slane %v1357_v32, 4  ;;  %1603 = vmatpush.bf16.msra.mxu2 %v1594_v28  ;;  %1494 = vst.msk [vmem:[#allocation2 + $0x70] sm:$0xff] %vm1478_vm6, %v2589_v56 }
  0x77   : > { %1495 = vst.msk [vmem:[#allocation2 + $0x78] sm:$0x3] %vm1480_vm7, %v2589_v56 }
  0x78   : > { %v1363_v45 = vsel %vm2696_vm4, %v1358_v39, %v1362_v40  ;;  %1496 = vst.msk [vmem:[#allocation2 + $0x80] sm:$0xff] %vm1478_vm6, %v2589_v56 }
  0x79   : > { %v1399_v53 = vunpack.c.l.b16 %v1363_v45  ;;  %1497 = vst.msk [vmem:[#allocation2 + $0x88] sm:$0x3] %vm1480_vm7, %v2589_v56 }
  0x7a   : > { %1498 = vst.msk [vmem:[#allocation2 + $0x90] sm:$0xff] %vm1478_vm6, %v2589_v56 }
  0x7b   : > { %v1404_v63 = vpack.c.b16 %v1399_v53, %v1398_v52  ;;  %1499 = vst.msk [vmem:[#allocation2 + $0x98] sm:$0x3] %vm1480_vm7, %v2589_v56 }
  0x81   : > { %2420 = vmatmul.msk.bf16.gmra.mxu2 %vm433_vm1, %v2416_v62  ;;  %v2441_v62 = vor.u32 %v2560_v54, %v2440_v51 }
  0x83   : > { %2467 = vmatmul.msk.bf16.vlgmr.msra.gmra.mxu0 %vm433_vm1, %v1402_v5 }
  0x84   : > { %2446 = vmatmul.msk.bf16.vlgmr.msra.gmra.mxu3 %vm433_vm1, %v2433_v6  ;;  %v1372_v6 = vrot.slane %v1371_v1, 4 }
  0x86   : > { %v1377_v12 = vsel %vm2696_vm4, %v1372_v6, %v1376_v7 }
  0x87   : > { %v1400_v14 = vunpack.c.l.b16 %v1377_v12  ;;  %v2495_v12 = vld [vmem:[%s3307_s6 + $0x14] sm:$0xf] }
  0x88   : > { %v1850_v13 = vsel %vm1548_vm5, %v2495_v12, 0 }
  0x89   : > { %v1405_v19 = vpack.c.b16 %v1401_v15, %v1400_v14  ;;  %v2490_v14 = vld [vmem:[%s3307_s6 + $0x10] sm:$0xf]  ;;  %1859 = vmatpush.bf16.msrb.mxu2 %v1850_v13 }
  0x90   : > { %v459_v34 = vpop.f32.mrf.mxu0 }
  0x92   : > { %v2911_v24 = vpop.f32.mrf.mxu1 }
  0x93   : > { %2468 = vmatmul.msk.bf16.gmra.mxu0 %vm433_vm1, %v1403_v29  ;;  %v1550_v29 = vsel %vm1548_vm5, %v2471_v27, 0 }
  0x94   : > { %2447 = vmatmul.msk.bf16.gmra.mxu3 %vm433_vm1, %v2437_v36  ;;  %1559 = vmatpush.bf16.msra.mxu1 %v1550_v29 }
  0x97   : > { %v2879_v43 = vpop.f32.mrf.mxu3 }
  0x98   : > { %v2885_v46 = vpop.f32.mrf.mxu0 }
  0x9a   : > { %v2927_v32 = vpop.f32.mrf.mxu1 }
  0x9f   : > { %v2891_v61 = vpop.f32.mrf.mxu3 }
  0xa0   : > { %v523_v0 = vpop.f32.mrf.mxu0 }
  0xa1   : > { %v524_v5 = vadd.f32 %v523_v0, %v459_v34 }
  0xa2   : > { %v2933_v37 = vpop.f32.mrf.mxu1 }
  0xa3   : > { %2469 = vmatmul.msk.bf16.gmra.mxu0 %vm433_vm1, %v1404_v63 }
  0xa4   : > { %2448 = vmatmul.msk.bf16.gmra.mxu3 %vm433_vm1, %v2441_v62  ;;  %v2915_v25 = vpop.f32.mrf.mxu2  ;;  %v2480_v62 = vld [vmem:[%s3307_s6 + $0x8] sm:$0xf] }
  0xa5   : > { %v1652_v0 = vsel %vm1548_vm5, %v2480_v62, 0 }
  0xa6   : > { %1661 = vmatpush.bf16.msrb.mxu3 %v1652_v0 }
  0xa7   : > { %v2895_v10 = vpop.f32.mrf.mxu3 }
  0xa8   : > { %v2897_v11 = vpop.f32.mrf.mxu0 }
  0xa9   : > { %v526_v6 = vadd.f32 %v2897_v11, %v2885_v46  ;;  %v1784_v11 = vsel %vm1548_vm5, %v2490_v14, 0 }
  0xaa   : > { %v2941_v41 = vpop.f32.mrf.mxu1  ;;  %1793 = vmatpush.bf16.msrb.mxu1 %v1784_v11 }
  0xac   : > { %v2929_v33 = vpop.f32.mrf.mxu2 }
  0xaf   : > { %v2905_v18 = vpop.f32.mrf.mxu3 }
  0xb0   : > { %v712_v20 = vpop.f32.mrf.mxu0 }
  0xb1   : > { %v732_v22 = vadd.f32 %v712_v20, %v524_v5  ;;  %v2485_v5 = vld [vmem:[%s3307_s6 + $0xc] sm:$0xf] }
  0xb2   : > { %v2951_v48 = vpop.f32.mrf.mxu1  ;;  %v1718_v9 = vsel %vm1548_vm5, %v2485_v5, 0 }
  0xb3   : > { %2470 = vmatmul.msk.bf16.gmra.mxu0 %vm433_vm1, %v1405_v19 }
  0xb4   : > { %2449 = vmatmul.msk.bf16.gmra.mxu3 %vm433_vm1, %v2445_v21  ;;  %v2935_v38 = vpop.f32.mrf.mxu2  ;;  %1727 = vmatpush.bf16.msrb.mxu0 %v1718_v9  ;;  %v529_v21 = vadd.f32 %v2911_v24, %v2879_v43  ;;  %v531_v24 = vadd.f32 %v2927_v32, %v2891_v61  ;;  %v1625_v61 = vld [vmem:[#allocation2 + $0x2] sm:$0xff] }
  0xb6   : > { %v734_v29 = vadd.f32 %v2915_v25, %v529_v21  ;;  %v735_v25 = vadd.f32 %v2929_v33, %v531_v24 }
  0xb7   : > { %v2909_v23 = vpop.f32.mrf.mxu3 }
  0xb8   : > { %v2913_v35 = vpop.f32.mrf.mxu0 }
  0xb9   : > { %v733_v46 = vadd.f32 %v2913_v35, %v526_v6  ;;  %v3021_v35 = vld [vmem:[%s3306_s5] ss:$0 sm:$0xff] }
  0xba   : > { %v2961_v53 = vpop.f32.mrf.mxu1 }
  0xbc   : > { %v2943_v42 = vpop.f32.mrf.mxu2 }
  0xbf   : > { %v2925_v30 = vpop.f32.mrf.mxu3 }
  0xc0   : > { %v876_v31 = vpop.f32.mrf.mxu0 }
  0xc2   : > { %v1070_v58 = vpop.f32.mrf.mxu1 }
  0xc4   : > { %v2955_v50 = vpop.f32.mrf.mxu2 }
  0xc7   : > { %v794_v34 = vpop.f32.mrf.mxu3 }
  0xc8   : > { %v2931_v36 = vpop.f32.mrf.mxu0  ;;  %v814_v1 = vadd.f32 %v794_v34, %v732_v22 }
  0xca   : > { %v1072_v2 = vpop.f32.mrf.mxu1  ;;  %v896_v7 = vadd.f32 %v876_v31, %v814_v1 }
  0xcc   : > { %v2963_v54 = vpop.f32.mrf.mxu2  ;;  %v1090_v15 = vadd.f32 %v1070_v58, %v896_v7  ;;  %v1522_v7 = vld [vmem:[#allocation2 + $0x1] sm:$0xff] }
  0xcf   : > { %v2937_v39 = vpop.f32.mrf.mxu3 }
  0xd0   : > { %v2939_v40 = vpop.f32.mrf.mxu0  ;;  %v815_v16 = vadd.f32 %v2937_v39, %v733_v46 }
  0xd2   : > { %v1075_v19 = vpop.f32.mrf.mxu1  ;;  %v897_v22 = vadd.f32 %v2931_v36, %v815_v16 }
  0xd4   : > { %v1153_v59 = vpop.f32.mrf.mxu2  ;;  %v1091_v34 = vadd.f32 %v1072_v2, %v897_v22 }
  0xd5   : > { %v1173_v17 = vadd.f32 %v1153_v59, %v1090_v15 }
  0xd7   : > { %v2945_v44 = vpop.f32.mrf.mxu3 }
  0xd8   : > { %v2947_v45 = vpop.f32.mrf.mxu0  ;;  %v816_v39 = vadd.f32 %v2945_v44, %v734_v29 }
  0xda   : > { %v898_v59 = vadd.f32 %v2939_v40, %v816_v39  ;;  %v1077_v62 = vpop.f32.mrf.mxu1  ;;  %v534_v40 = vadd.f32 %v2933_v37, %v2895_v10 }
  0xdc   : > { %v1155_v3 = vpop.f32.mrf.mxu2  ;;  %v1092_v6 = vadd.f32 %v1075_v19, %v898_v59  ;;  %v736_v19 = vadd.f32 %v2935_v38, %v534_v40 }
  0xdd   : > { %v1174_v58 = vadd.f32 %v1155_v3, %v1091_v34 }
  0xdf   : > { %v2949_v47 = vpop.f32.mrf.mxu3 }
  0xe0   : > { %v2953_v49 = vpop.f32.mrf.mxu0  ;;  %v817_v44 = vadd.f32 %v2949_v47, %v735_v25 }
  0xe2   : > { %v899_v12 = vadd.f32 %v2947_v45, %v817_v44  ;;  %v1080_v10 = vpop.f32.mrf.mxu1 }
  0xe4   : > { %v1158_v28 = vpop.f32.mrf.mxu2  ;;  %v1093_v45 = vadd.f32 %v1077_v62, %v899_v12 }
  0xe5   : > { %v1175_v32 = vadd.f32 %v1158_v28, %v1092_v6  ;;  %v536_v28 = vadd.f32 %v2941_v41, %v2905_v18 }
  0xe7   : > { %v2957_v51 = vpop.f32.mrf.mxu3 }
  0xe8   : > { %v2959_v52 = vpop.f32.mrf.mxu0 }
  0xec   : > { %v1160_v5 = vpop.f32.mrf.mxu2 }
  0xef   : > { %v2965_v55 = vpop.f32.mrf.mxu3 }
  0xf0   : > { %v2968_v57 = vpop.f32.mrf.mxu0 }
  0xf4   : > { %v1163_v22 = vpop.f32.mrf.mxu2 }
  0xf7   : > { %v2977_v60 = vpop.f32.mrf.mxu3 }
  0xf8   : > { %v2983_v63 = vpop.f32.mrf.mxu0 }
  0xff   : > { %v2993_v4 = vpop.f32.mrf.mxu3 }
 0x100   : > { %v1430_v8 = vpop.f32.mrf.mxu0 }
 0x107   : > { %v1236_v20 = vpop.f32.mrf.mxu3 }
 0x108   : > { %v1256_v26 = vadd.f32 %v1236_v20, %v1173_v17  ;;  %v1432_v27 = vpop.f32.mrf.mxu0  ;;  %v818_v20 = vadd.f32 %v2957_v51, %v736_v19  ;;  %v2500_v19 = vld [vmem:[%s3307_s6 + $0x18] sm:$0xf] }
 0x10a   : > { %v1450_v31 = vadd.f32 %v1430_v8, %v1256_v26  ;;  %v1509_v8 = vld [vmem:[#allocation2] sm:$0xff]  ;;  %v1176_v26 = vadd.f32 %v1160_v5, %v1093_v45 }
 0x10c   : > { %v1462_v56 = vadd.f32 %v3021_v35, %v1450_v31  ;;  %v900_v31 = vadd.f32 %v2953_v49, %v818_v20 }
 0x10e   : > { %v1470_v43 = vmax.f32 %v1462_v56, 0.0  ;;  %v737_v56 = vadd.f32 %v2943_v42, %v536_v28  ;;  %v1094_v24 = vadd.f32 %v1080_v10, %v900_v31 }
 0x10f   : > { %v1238_v36 = vpop.f32.mrf.mxu3 }
 0x110   : > { %1501 = vst.msk [vmem:[#allocation2 + $0x11] sm:$0xff] %vm1478_vm6, %v1470_v43  ;;  %v1257_v0 = vadd.f32 %v1238_v36, %v1174_v58  ;;  %v1435_v1 = vpop.f32.mrf.mxu0  ;;  %v819_v51 = vadd.f32 %v2965_v55, %v737_v56  ;;  %v1082_v36 = vpop.f32.mrf.mxu1  ;;  %v1177_v41 = vadd.f32 %v1163_v22, %v1094_v24  ;;  %v2510_v24 = vld [vmem:[%s3307_s6 + $0x20] sm:$0xf] }
 0x112   : > { %v1451_v2 = vadd.f32 %v1432_v27, %v1257_v0  ;;  %v539_v0 = vadd.f32 %v2951_v48, %v2909_v23  ;;  %v901_v42 = vadd.f32 %v2959_v52, %v819_v51  ;;  %v2505_v51 = vld [vmem:[%s3307_s6 + $0x1c] sm:$0xf] }
 0x114   : > { %v1463_v3 = vadd.f32 %v3021_v35, %v1451_v2  ;;  %v738_v48 = vadd.f32 %v2955_v50, %v539_v0  ;;  %v541_v50 = vadd.f32 %v2961_v53, %v2925_v30  ;;  %v1917_v53 = vsel %vm1548_vm5, %v2500_v19, 0 }
 0x115   : > { %1926 = vmatpush.bf16.msra.mxu3 %v1917_v53  ;;  %v2562_v53 = vld [vmem:[%s2780_s24 + $0x4] sm:$0xf0] }
 0x116   : > { %v1471_v9 = vmax.f32 %v1463_v3, 0.0 }
 0x117   : > { %v1241_v13 = vpop.f32.mrf.mxu3  ;;  %v3036_v14 = vld [vmem:[#allocation2 + $0x11] sm:$0xff] }
 0x118   : > { %v1510_v33 = vld [vmem:[#allocation2 + $0x10] sm:$0xff]  ;;  %1502 = vst.msk [vmem:[#allocation2 + $0x21] sm:$0xff] %vm1478_vm6, %v1471_v9  ;;  %v1258_v47 = vadd.f32 %v1241_v13, %v1175_v32  ;;  %v1530_v11 = vpack.c.bf16 %v3036_v14, %v1522_v7  ;;  %v1437_v17 = vpop.f32.mrf.mxu0  ;;  %v1095_v7 = vadd.f32 %v1082_v36, %v901_v42  ;;  %v1085_v40 = vpop.f32.mrf.mxu1 }
 0x119   : > { %v3038_v46 = vld [vmem:[#allocation2 + $0x12] sm:$0xff]  ;;  %v1517_v15 = vpack.c.bf16 %v1510_v33, %v1509_v8  ;;  %v820_v8 = vadd.f32 %v2977_v60, %v738_v48 }
 0x11a   : > { %v1633_v16 = vpack.c.bf16 %v3038_v46, %v1625_v61  ;;  %v1452_v37 = vadd.f32 %v1435_v1, %v1258_v47  ;;  %2472 = vmatmul.msk.bf16.vlgmr.msra.gmra.mxu1 %vm1478_vm6, %v1530_v11  ;;  %v1165_v1 = vpop.f32.mrf.mxu2 }
 0x11b   : > { %2476 = vmatmul.msk.bf16.vlgmr.msra.gmra.mxu2 %vm1478_vm6, %v1517_v15  ;;  %v1178_v9 = vadd.f32 %v1165_v1, %v1095_v7  ;;  %v902_v47 = vadd.f32 %v2968_v57, %v820_v8 }
 0x11c   : > { %2481 = vmatmul.msk.bf16.vlgmr.msrb.gmra.mxu3 %vm1478_vm6, %v1633_v16  ;;  %v1464_v21 = vadd.f32 %v3021_v35, %v1452_v37  ;;  %v739_v16 = vadd.f32 %v2963_v54, %v541_v50 }
 0x11d   : > { %v1096_v10 = vadd.f32 %v1085_v40, %v902_v47 }
 0x11e   : > { %v1472_v27 = vmax.f32 %v1464_v21, 0.0  ;;  %v821_v30 = vadd.f32 %v2993_v4, %v739_v16 }
 0x11f   : > { %v1243_v38 = vpop.f32.mrf.mxu3  ;;  %v1692_v29 = vld [vmem:[#allocation2 + $0x20] sm:$0xff] }
 0x120   : > { %1503 = vst.msk [vmem:[#allocation2 + $0x31] sm:$0xff] %vm1478_vm6, %v1472_v27  ;;  %v1259_v34 = vadd.f32 %v1243_v38, %v1176_v26  ;;  %v1699_v39 = vpack.c.bf16 %v1692_v29, %v1510_v33  ;;  %v1440_v43 = vpop.f32.mrf.mxu0  ;;  %v3057_v62 = vld [vmem:[#allocation2 + $0x21] sm:$0xff]  ;;  %v903_v21 = vadd.f32 %v2983_v63, %v821_v30  ;;  %v1087_v38 = vpop.f32.mrf.mxu1 }
 0x121   : > { %v3059_v49 = vld [vmem:[#allocation2 + $0x22] sm:$0xff] }
 0x122   : > { %v1453_v58 = vadd.f32 %v1437_v17, %v1259_v34  ;;  %2486 = vmatmul.msk.bf16.vlgmr.msrb.gmra.mxu0 %vm1478_vm6, %v1699_v39  ;;  %v1168_v60 = vpop.f32.mrf.mxu2  ;;  %v1097_v56 = vadd.f32 %v1087_v38, %v903_v21  ;;  %v2517_v30 = vld [vmem:[%s2780_s24] sm:$0xf]  ;;  %v2563_v21 = vld [vmem:[%s2780_s24 + $0x14] sm:$0xf0] }
 0x123   : > { %v1179_v37 = vadd.f32 %v1168_v60, %v1096_v10  ;;  %v2518_v10 = vor.u32 %v2562_v53, %v2517_v30 }
 0x124   : > { %v1465_v18 = vadd.f32 %v3021_v35, %v1453_v58 }
 0x126   : > { %v1473_v59 = vmax.f32 %v1465_v18, 0.0  ;;  %v1983_v18 = vsel %vm1548_vm5, %v2505_v51, 0 }
 0x127   : > { %v1246_v25 = vpop.f32.mrf.mxu3  ;;  %v3064_v2 = vld [vmem:[#allocation2 + $0x31] sm:$0xff]  ;;  %1992 = vmatpush.bf16.msra.mxu0 %v1983_v18 }
 0x128   : > { %v1512_v55 = vld [vmem:[#allocation2 + $0x30] sm:$0xff]  ;;  %1504 = vst.msk [vmem:[#allocation2 + $0x41] sm:$0xff] %vm1478_vm6, %v1473_v59  ;;  %v1260_v5 = vadd.f32 %v1246_v25, %v1177_v41  ;;  %v3071_v6 = vpack.c.bf16 %v3064_v2, %v3057_v62  ;;  %v1442_v32 = vpop.f32.mrf.mxu0  ;;  %v2049_v59 = vsel %vm1548_vm5, %v2510_v24, 0 }
 0x129   : > { %v3066_v44 = vld [vmem:[#allocation2 + $0x32] sm:$0xff]  ;;  %v3073_v3 = vpack.c.bf16 %v1512_v55, %v1692_v29  ;;  %2058 = vmatpush.bf16.msra.mxu1 %v2049_v59 }
 0x12a   : > { %v3077_v23 = vpack.c.bf16 %v3066_v44, %v3059_v49  ;;  %v1454_v52 = vadd.f32 %v1440_v43, %v1260_v5  ;;  %2473 = vmatmul.msk.bf16.gmra.mxu1 %vm1478_vm6, %v3071_v6  ;;  %v1170_v58 = vpop.f32.mrf.mxu2  ;;  %v2108_v43 = vld [vmem:[%s3309_s8] sm:$0x3]  ;;  %v2529_v59 = vld [vmem:[%s2780_s24 + $0x30] sm:$0xf] }
 0x12b   : > { %2477 = vmatmul.msk.bf16.gmra.mxu2 %vm1478_vm6, %v3073_v3  ;;  %v2142_v41 = vsel %vm446_vm0, %v2108_v43, 0  ;;  %v1180_v0 = vadd.f32 %v1170_v58, %v1097_v56 }
 0x12c   : > { %2482 = vmatmul.msk.bf16.gmra.mxu3 %vm1478_vm6, %v3077_v23  ;;  %v1466_v61 = vadd.f32 %v3021_v35, %v1454_v52  ;;  %2151 = vmatpush.bf16.msra.mxu2 %v2142_v41 }
 0x12e   : > { %v1474_v12 = vmax.f32 %v1466_v61, 0.0 }
 0x12f   : > { %v1248_v13 = vpop.f32.mrf.mxu3  ;;  %v1694_v33 = vld [vmem:[#allocation2 + $0x40] sm:$0xff] }
 0x130   : > { %1505 = vst.msk [vmem:[#allocation2 + $0x51] sm:$0xff] %vm1478_vm6, %v1474_v12  ;;  %v1261_v11 = vadd.f32 %v1248_v13, %v1178_v9  ;;  %v1700_v15 = vpack.c.bf16 %v1694_v33, %v1512_v55  ;;  %v3100_v20 = vld [vmem:[#allocation2 + $0x41] sm:$0xff]  ;;  %v1445_v22 = vpop.f32.mrf.mxu0 }
 0x131   : > { %v3102_v54 = vld [vmem:[#allocation2 + $0x42] sm:$0xff]  ;;  %v1766_v16 = vpack.c.bf16 %v3100_v20, %v3064_v2  ;;  %v1897_v2 = vld [vmem:[#allocation2 + $0x90] sm:$0xff] }
 0x132   : > { %v1455_v17 = vadd.f32 %v1442_v32, %v1261_v11  ;;  %2487 = vmatmul.msk.bf16.gmra.mxu0 %vm1478_vm6, %v1700_v15  ;;  %v1765_v11 = vpack.c.bf16 %v3057_v62, %v3036_v14  ;;  %v1831_v15 = vpack.c.bf16 %v3059_v49, %v3038_v46  ;;  %v1832_v60 = vpack.c.bf16 %v3102_v54, %v3066_v44 }
 0x134   : > { %v1467_v57 = vadd.f32 %v3021_v35, %v1455_v17  ;;  %v1963_v17 = vld [vmem:[#allocation2 + $0x91] sm:$0xff] }
 0x136   : > { %v1475_v45 = vmax.f32 %v1467_v57, 0.0 }
 0x137   : > { %v1251_v26 = vpop.f32.mrf.mxu3  ;;  %v3105_v27 = vld [vmem:[#allocation2 + $0x51] sm:$0xff] }
 0x138   : > { %v1514_v28 = vld [vmem:[#allocation2 + $0x50] sm:$0xff]  ;;  %1506 = vst.msk [vmem:[#allocation2 + $0x61] sm:$0xff] %vm1478_vm6, %v1475_v45  ;;  %v1262_v29 = vadd.f32 %v1251_v26, %v1179_v37  ;;  %v1532_v31 = vpack.c.bf16 %v3105_v27, %v3100_v20  ;;  %v1447_v48 = vpop.f32.mrf.mxu0 }
 0x139   : > { %v3107_v4 = vld [vmem:[#allocation2 + $0x52] sm:$0xff]  ;;  %v1519_v34 = vpack.c.bf16 %v1514_v28, %v1694_v33 }
 0x13a   : > { %v3114_v39 = vpack.c.bf16 %v3107_v4, %v3102_v54  ;;  %v1456_v63 = vadd.f32 %v1445_v22, %v1262_v29  ;;  %2474 = vmatmul.msk.bf16.gmra.mxu1 %vm1478_vm6, %v1532_v31  ;;  %v2521_v54 = vld [vmem:[%s2780_s24 + $0x10] sm:$0xf] }
 0x13b   : > { %2478 = vmatmul.msk.bf16.gmra.mxu2 %vm1478_vm6, %v1519_v34 }
 0x13c   : > { %2483 = vmatmul.msk.bf16.gmra.mxu3 %vm1478_vm6, %v3114_v39  ;;  %v1468_v36 = vadd.f32 %v3021_v35, %v1456_v63 }
 0x13e   : > { %v1476_v42 = vmax.f32 %v1468_v36, 0.0 }
 0x13f   : > { %v1253_v1 = vpop.f32.mrf.mxu3  ;;  %v1696_v25 = vld [vmem:[#allocation2 + $0x60] sm:$0xff] }
 0x140   : > { %1507 = vst.msk [vmem:[#allocation2 + $0x71] sm:$0xff] %vm1478_vm6, %v1476_v42  ;;  %v1263_v55 = vadd.f32 %v1253_v1, %v1180_v0  ;;  %v1701_v5 = vpack.c.bf16 %v1696_v25, %v1514_v28  ;;  %v1528_v61 = vld [vmem:[#allocation2 + $0x61] sm:$0xff]  ;;  %v2565_v0 = vld [vmem:[%s2780_s24 + $0x34] sm:$0xf0] }
 0x141   : > { %v1631_v32 = vld [vmem:[#allocation2 + $0x62] sm:$0xff]  ;;  %v1767_v14 = vpack.c.bf16 %v1528_v61, %v3105_v27  ;;  %v2522_v27 = vor.u32 %v2563_v21, %v2521_v54  ;;  %v2029_v1 = vld [vmem:[#allocation2 + $0x92] sm:$0xff] }
 0x142   : > { %v1457_v52 = vadd.f32 %v1447_v48, %v1263_v55  ;;  %2488 = vmatmul.msk.bf16.gmra.mxu0 %vm1478_vm6, %v1701_v5  ;;  %v1833_v46 = vpack.c.bf16 %v1631_v32, %v3107_v4  ;;  %v2530_v55 = vor.u32 %v2565_v0, %v2529_v59 }
 0x144   : > { %v1469_v7 = vadd.f32 %v3021_v35, %v1457_v52 }
 0x146   : > { %v1477_v8 = vmax.f32 %v1469_v7, 0.0 }
 0x147   : > { %v1529_v9 = vld [vmem:[#allocation2 + $0x71] sm:$0xff] }
 0x148   : > { %v1516_v40 = vld [vmem:[#allocation2 + $0x70] sm:$0xff]  ;;  %1508 = vst.msk [vmem:[#allocation2 + $0x81] sm:$0xff] %vm1478_vm6, %v1477_v8  ;;  %v1533_v50 = vpack.c.bf16 %v1529_v9, %v1528_v61 }
 0x149   : > { %v1632_v12 = vld [vmem:[#allocation2 + $0x72] sm:$0xff]  ;;  %v1520_v13 = vpack.c.bf16 %v1516_v40, %v1696_v25 }
 0x14a   : > { %v3137_v33 = vpack.c.bf16 %v1632_v12, %v1631_v32  ;;  %2475 = vmatmul.msk.bf16.gmra.mxu1 %vm1478_vm6, %v1533_v50 }
 0x14b   : > { %2479 = vmatmul.msk.bf16.gmra.mxu2 %vm1478_vm6, %v1520_v13 }
 0x14c   : > { %2484 = vmatmul.msk.bf16.gmra.mxu3 %vm1478_vm6, %v3137_v33 }
 0x14f   : > { %v1698_v35 = vld [vmem:[#allocation2 + $0x80] sm:$0xff] }
 0x150   : > { %v1702_v47 = vpack.c.bf16 %v1698_v35, %v1516_v40  ;;  %v1764_v62 = vld [vmem:[#allocation2 + $0x81] sm:$0xff] }
 0x151   : > { %v1830_v49 = vld [vmem:[#allocation2 + $0x82] sm:$0xff]  ;;  %v1768_v44 = vpack.c.bf16 %v1764_v62, %v1529_v9  ;;  %v1967_v19 = vpack.c.bf16 %v1963_v17, %v1764_v62 }
 0x152   : > { %2489 = vmatmul.msk.bf16.gmra.mxu0 %vm1478_vm6, %v1702_v47  ;;  %v2033_v52 = vpack.c.bf16 %v2029_v1, %v1830_v49 }
 0x15a   : > { %2491 = vmatmul.msk.bf16.vlgmr.msrb.gmra.mxu1 %vm1478_vm6, %v1765_v11 }
 0x15b   : > { %2496 = vmatmul.msk.bf16.vlgmr.msrb.gmra.mxu2 %vm1478_vm6, %v1831_v15 }
 0x15c   : > { %2501 = vmatmul.msk.bf16.vlgmr.msra.gmra.mxu3 %vm1478_vm6, %v3073_v3  ;;  %v1901_v3 = vpack.c.bf16 %v1897_v2, %v1698_v35 }
 0x162   : > { %2506 = vmatmul.msk.bf16.vlgmr.msra.gmra.mxu0 %vm1478_vm6, %v3071_v6  ;;  %v1834_v6 = vpack.c.bf16 %v1830_v49, %v1632_v12 }
 0x16a   : > { %2492 = vmatmul.msk.bf16.gmra.mxu1 %vm1478_vm6, %v1766_v16 }
 0x16b   : > { %2497 = vmatmul.msk.bf16.gmra.mxu2 %vm1478_vm6, %v1832_v60 }
 0x16c   : > { %2502 = vmatmul.msk.bf16.gmra.mxu3 %vm1478_vm6, %v1519_v34  ;;  %v2564_v34 = vld [vmem:[%s2780_s24 + $0x24] sm:$0xf0] }
 0x172   : > { %2507 = vmatmul.msk.bf16.gmra.mxu0 %vm1478_vm6, %v1532_v31  ;;  %v2525_v31 = vld [vmem:[%s2780_s24 + $0x20] sm:$0xf] }
 0x173   : > { %v2526_v58 = vor.u32 %v2564_v34, %v2525_v31 }
 0x17a   : > { %2493 = vmatmul.msk.bf16.gmra.mxu1 %vm1478_vm6, %v1767_v14 }
 0x17b   : > { %2498 = vmatmul.msk.bf16.gmra.mxu2 %vm1478_vm6, %v1833_v46 }
 0x17c   : > { %2503 = vmatmul.msk.bf16.gmra.mxu3 %vm1478_vm6, %v1520_v13 }
 0x182   : > { %2508 = vmatmul.msk.bf16.gmra.mxu0 %vm1478_vm6, %v1533_v50 }
 0x18a   : > { %2494 = vmatmul.msk.bf16.gmra.mxu1 %vm1478_vm6, %v1768_v44 }
 0x18b   : > { %2499 = vmatmul.msk.bf16.gmra.mxu2 %vm1478_vm6, %v1834_v6 }
 0x18c   : > { %2504 = vmatmul.msk.bf16.gmra.mxu3 %vm1478_vm6, %v1901_v3 }
 0x192   : > { %2509 = vmatmul.msk.bf16.gmra.mxu0 %vm1478_vm6, %v1967_v19 }
 0x197   : > { %v1561_v57 = vpop.f32.mrf.mxu1 }
 0x19a   : > { %2511 = vmatmul.msk.bf16.vlgmr.msra.gmra.mxu1 %vm1478_vm6, %v3077_v23 }
 0x19b   : > { %2531 = vmatmul.msk.bf16.vlgmr.msra.gmra.mxu2 %vm433_vm1, %v2518_v10 }
 0x19e   : > { %v1605_v37 = vpop.f32.mrf.mxu2 }
 0x19f   : > { %v3177_v45 = vadd.f32 %v1605_v37, %v1561_v57  ;;  %v1563_v20 = vpop.f32.mrf.mxu1  ;;  %v1663_v29 = vpop.f32.mrf.mxu3 }
 0x1a0   : > { %v1729_v51 = vpop.f32.mrf.mxu0 }
 0x1a1   : > { %v1683_v57 = vadd.f32 %v1663_v29, %v3177_v45 }
 0x1a3   : > { %v1749_v54 = vadd.f32 %v1729_v51, %v1683_v57 }
 0x1a6   : > { %v1607_v22 = vpop.f32.mrf.mxu2 }
 0x1a7   : > { %v3181_v26 = vadd.f32 %v1607_v22, %v1563_v20  ;;  %v1566_v28 = vpop.f32.mrf.mxu1 }
 0x1a8   : > { %v1731_v41 = vpop.f32.mrf.mxu0 }
 0x1aa   : > { %2512 = vmatmul.msk.bf16.gmra.mxu1 %vm1478_vm6, %v3114_v39  ;;  %v1665_v39 = vpop.f32.mrf.mxu3 }
 0x1ab   : > { %2532 = vmatmul.msk.bf16.gmra.mxu2 %vm433_vm1, %v2522_v27 }
 0x1ae   : > { %v1610_v23 = vpop.f32.mrf.mxu2 }
 0x1af   : > { %v3186_v4 = vadd.f32 %v1610_v23, %v1566_v28  ;;  %v1568_v38 = vpop.f32.mrf.mxu1  ;;  %v1684_v28 = vadd.f32 %v1665_v39, %v3181_v26  ;;  %v3245_v26 = vld [vmem:[%s3308_s7] ss:$0 sm:$0xff] }
 0x1b0   : > { %v1734_v7 = vpop.f32.mrf.mxu0 }
 0x1b1   : > { %v1750_v34 = vadd.f32 %v1731_v41, %v1684_v28 }
 0x1b2   : > { %v1668_v5 = vpop.f32.mrf.mxu3 }
 0x1b3   : > { %v1685_v45 = vadd.f32 %v1668_v5, %v3186_v4 }
 0x1b5   : > { %v1751_v39 = vadd.f32 %v1734_v7, %v1685_v45 }
 0x1b6   : > { %v1612_v63 = vpop.f32.mrf.mxu2 }
 0x1b7   : > { %v3190_v56 = vadd.f32 %v1612_v63, %v1568_v38  ;;  %v1571_v43 = vpop.f32.mrf.mxu1 }
 0x1b8   : > { %v1736_v40 = vpop.f32.mrf.mxu0 }
 0x1ba   : > { %2513 = vmatmul.msk.bf16.gmra.mxu1 %vm1478_vm6, %v3137_v33  ;;  %v1670_v9 = vpop.f32.mrf.mxu3 }
 0x1bb   : > { %2533 = vmatmul.msk.bf16.gmra.mxu2 %vm433_vm1, %v2526_v58  ;;  %v1686_v4 = vadd.f32 %v1670_v9, %v3190_v56 }
 0x1be   : > { %v1615_v24 = vpop.f32.mrf.mxu2 }
 0x1bf   : > { %v3195_v36 = vadd.f32 %v1615_v24, %v1571_v43  ;;  %v1573_v18 = vpop.f32.mrf.mxu1 }
 0x1c0   : > { %v3209_v47 = vpop.f32.mrf.mxu0 }
 0x1c2   : > { %v3207_v33 = vpop.f32.mrf.mxu3 }
 0x1c6   : > { %v1617_v42 = vpop.f32.mrf.mxu2 }
 0x1c7   : > { %v3199_v25 = vadd.f32 %v1617_v42, %v1573_v18  ;;  %v1576_v48 = vpop.f32.mrf.mxu1 }
 0x1c8   : > { %v3213_v14 = vpop.f32.mrf.mxu0 }
 0x1ca   : > { %2514 = vmatmul.msk.bf16.gmra.mxu1 %vm1478_vm6, %v2033_v52  ;;  %v3211_v15 = vpop.f32.mrf.mxu3 }
 0x1cb   : > { %2534 = vmatmul.msk.bf16.gmra.mxu2 %vm433_vm1, %v2530_v55 }
 0x1ce   : > { %v1620_v8 = vpop.f32.mrf.mxu2 }
 0x1cf   : > { %v3203_v61 = vadd.f32 %v1620_v8, %v1576_v48  ;;  %v1578_v32 = vpop.f32.mrf.mxu1 }
 0x1d0   : > { %v3217_v2 = vpop.f32.mrf.mxu0 }
 0x1d2   : > { %v3215_v62 = vpop.f32.mrf.mxu3 }
 0x1d6   : > { %v1622_v12 = vpop.f32.mrf.mxu2 }
 0x1d7   : > { %v3205_v50 = vadd.f32 %v1622_v12, %v1578_v32  ;;  %v1795_v13 = vpop.f32.mrf.mxu1 }
 0x1d8   : > { %v3223_v17 = vpop.f32.mrf.mxu0  ;;  %v1815_v21 = vadd.f32 %v1795_v13, %v1749_v54  ;;  %v1752_v13 = vadd.f32 %v1736_v40, %v1686_v4 }
 0x1da   : > { %v3221_v3 = vpop.f32.mrf.mxu3 }
 0x1de   : > { %v1861_v35 = vpop.f32.mrf.mxu2 }
 0x1df   : > { %v1797_v11 = vpop.f32.mrf.mxu1  ;;  %v1881_v23 = vadd.f32 %v1861_v35, %v1815_v21 }
 0x1e0   : > { %v1994_v37 = vpop.f32.mrf.mxu0  ;;  %v1816_v58 = vadd.f32 %v1797_v11, %v1750_v34 }
 0x1e2   : > { %v1928_v53 = vpop.f32.mrf.mxu3 }
 0x1e3   : > { %v1948_v63 = vadd.f32 %v1928_v53, %v1881_v23 }
 0x1e5   : > { %v2014_v29 = vadd.f32 %v1994_v37, %v1948_v63 }
 0x1e6   : > { %v1863_v16 = vpop.f32.mrf.mxu2 }
 0x1e7   : > { %v1800_v60 = vpop.f32.mrf.mxu1  ;;  %v1882_v51 = vadd.f32 %v1863_v16, %v1816_v58 }
 0x1e8   : > { %v1996_v31 = vpop.f32.mrf.mxu0  ;;  %v1817_v41 = vadd.f32 %v1800_v60, %v1751_v39  ;;  %v1687_v60 = vadd.f32 %v3207_v33, %v3195_v36  ;;  %v1688_v36 = vadd.f32 %v3211_v15, %v3199_v25  ;;  %v1689_v15 = vadd.f32 %v3215_v62, %v3203_v61 }
 0x1e9   : > { %v1690_v61 = vadd.f32 %v3221_v3, %v3205_v50 }
 0x1ea   : > { %v1930_v22 = vpop.f32.mrf.mxu3  ;;  %v1753_v40 = vadd.f32 %v3209_v47, %v1687_v60 }
 0x1eb   : > { %v1949_v0 = vadd.f32 %v1930_v22, %v1882_v51 }
 0x1ed   : > { %v2015_v5 = vadd.f32 %v1996_v31, %v1949_v0 }
 0x1ee   : > { %v1866_v46 = vpop.f32.mrf.mxu2 }
 0x1ef   : > { %v1802_v49 = vpop.f32.mrf.mxu1  ;;  %v1883_v48 = vadd.f32 %v1866_v46, %v1817_v41 }
 0x1f0   : > { %v1999_v42 = vpop.f32.mrf.mxu0  ;;  %v1818_v11 = vadd.f32 %v1802_v49, %v1752_v13 }
 0x1f2   : > { %v1933_v24 = vpop.f32.mrf.mxu3 }
 0x1f3   : > { %v1950_v35 = vadd.f32 %v1933_v24, %v1883_v48 }
 0x1f5   : > { %v2016_v46 = vadd.f32 %v1999_v42, %v1950_v35 }
 0x1f6   : > { %v1868_v44 = vpop.f32.mrf.mxu2 }
 0x1f7   : > { %v3219_v6 = vpop.f32.mrf.mxu1  ;;  %v1884_v53 = vadd.f32 %v1868_v44, %v1818_v11 }
 0x1f8   : > { %v2001_v9 = vpop.f32.mrf.mxu0  ;;  %v1819_v28 = vadd.f32 %v3219_v6, %v1753_v40 }
 0x1fa   : > { %v1935_v12 = vpop.f32.mrf.mxu3 }
 0x1fb   : > { %v1951_v22 = vadd.f32 %v1935_v12, %v1884_v53 }
 0x1fd   : > { %v2017_v33 = vadd.f32 %v2001_v9, %v1951_v22 }
 0x1fe   : > { %v3225_v19 = vpop.f32.mrf.mxu2 }
 0x1ff   : > { %v3227_v30 = vpop.f32.mrf.mxu1  ;;  %v1885_v44 = vadd.f32 %v3225_v19, %v1819_v28 }
 0x200   : > { %v2004_v63 = vpop.f32.mrf.mxu0 }
 0x202   : > { %v1938_v49 = vpop.f32.mrf.mxu3 }
 0x203   : > { %v1952_v51 = vadd.f32 %v1938_v49, %v1885_v44 }
 0x205   : > { %v2018_v19 = vadd.f32 %v2004_v63, %v1952_v51 }
 0x206   : > { %v3229_v10 = vpop.f32.mrf.mxu2 }
 0x207   : > { %v3232_v20 = vpop.f32.mrf.mxu1 }
 0x208   : > { %v2006_v41 = vpop.f32.mrf.mxu0 }
 0x20e   : > { %v3234_v27 = vpop.f32.mrf.mxu2 }
 0x20f   : > { %v3237_v38 = vpop.f32.mrf.mxu1 }
 0x216   : > { %v3239_v43 = vpop.f32.mrf.mxu2 }
 0x217   : > { %v2060_v18 = vpop.f32.mrf.mxu1 }
 0x218   : > { %v2080_v59 = vadd.f32 %v2060_v18, %v2014_v29  ;;  %v1754_v29 = vadd.f32 %v3213_v14, %v1688_v36  ;;  %v1940_v18 = vpop.f32.mrf.mxu3 }
 0x21a   : > { %v2092_v1 = vadd.f32 %v3245_v26, %v2080_v59  ;;  %v1820_v6 = vadd.f32 %v3227_v30, %v1754_v29 }
 0x21c   : > { %v1886_v59 = vadd.f32 %v3229_v10, %v1820_v6 }
 0x21e   : > { %v2153_v55 = vpop.f32.mrf.mxu2 }
 0x21f   : > { %v2173_v52 = vadd.f32 %v2153_v55, %v2092_v1  ;;  %v2062_v8 = vpop.f32.mrf.mxu1  ;;  %v1755_v1 = vadd.f32 %v3217_v2, %v1689_v15  ;;  %v1953_v55 = vadd.f32 %v1940_v18, %v1886_v59 }
 0x220   : > { %v2081_v32 = vadd.f32 %v2062_v8, %v2015_v5 }
 0x221   : > { %v2181_v7 = vmax.f32 %v2173_v52, 0.0  ;;  %v1821_v30 = vadd.f32 %v3232_v20, %v1755_v1  ;;  %v2019_v62 = vadd.f32 %v2006_v41, %v1953_v55  ;;  %v1943_v52 = vpop.f32.mrf.mxu3  ;;  %v2009_v20 = vpop.f32.mrf.mxu0 }
 0x222   : > { %v2093_v56 = vadd.f32 %v3245_v26, %v2081_v32  ;;  %v1756_v32 = vadd.f32 %v3223_v17, %v1690_v61 }
 0x223   : > { %2189 = vst.msk [vmem:[%s3253_s12] sm:$0xff] %vm1478_vm6, %v2181_v7  ;;  %v1887_v10 = vadd.f32 %v3234_v27, %v1821_v30 }
 0x224   : > { %v1822_v13 = vadd.f32 %v3237_v38, %v1756_v32 }
 0x225   : > { %v1954_v12 = vadd.f32 %v1943_v52, %v1887_v10 }
 0x226   : > { %v2155_v16 = vpop.f32.mrf.mxu2  ;;  %v1888_v27 = vadd.f32 %v3239_v43, %v1822_v13 }
 0x227   : > { %v2174_v57 = vadd.f32 %v2155_v16, %v2093_v56  ;;  %v2065_v37 = vpop.f32.mrf.mxu1  ;;  %v2020_v3 = vadd.f32 %v2009_v20, %v1954_v12 }
 0x228   : > { %v2082_v21 = vadd.f32 %v2065_v37, %v2016_v46 }
 0x229   : > { %v2182_v54 = vmax.f32 %v2174_v57, 0.0  ;;  %v1945_v60 = vpop.f32.mrf.mxu3  ;;  %v2011_v53 = vpop.f32.mrf.mxu0 }
 0x22a   : > { %v2094_v23 = vadd.f32 %v3245_v26, %v2082_v21  ;;  %v1955_v17 = vadd.f32 %v1945_v60, %v1888_v27 }
 0x22b   : > { %2190 = vst.msk [vmem:[%s3253_s12 + $0x8] sm:$0xff] %vm1478_vm6, %v2182_v54 }
 0x22c   : > { %v2021_v57 = vadd.f32 %v2011_v53, %v1955_v17 }
 0x22e   : > { %v2158_v31 = vpop.f32.mrf.mxu2 }
 0x22f   : > { %v2175_v34 = vadd.f32 %v2158_v31, %v2094_v23  ;;  %v2067_v58 = vpop.f32.mrf.mxu1 }
 0x230   : > { %v2083_v45 = vadd.f32 %v2067_v58, %v2017_v33 }
 0x231   : > { %v2183_v47 = vmax.f32 %v2175_v34, 0.0 }
 0x232   : > { %v2095_v24 = vadd.f32 %v3245_v26, %v2083_v45 }
 0x233   : > { %2191 = vst.msk [vmem:[%s3253_s12 + $0x10] sm:$0xff] %vm1478_vm6, %v2183_v47 }
 0x236   : > { %v2160_v25 = vpop.f32.mrf.mxu2 }
 0x237   : > { %v2176_v39 = vadd.f32 %v2160_v25, %v2095_v24  ;;  %v2070_v0 = vpop.f32.mrf.mxu1 }
 0x238   : > { %v2084_v14 = vadd.f32 %v2070_v0, %v2018_v19 }
 0x239   : > { %v2184_v42 = vmax.f32 %v2176_v39, 0.0 }
 0x23a   : > { %v2096_v4 = vadd.f32 %v3245_v26, %v2084_v14 }
 0x23b   : > { %2192 = vst.msk [vmem:[%s3253_s12 + $0x18] sm:$0xff] %vm1478_vm6, %v2184_v42 }
 0x23e   : > { %v2163_v5 = vpop.f32.mrf.mxu2 }
 0x23f   : > { %v2177_v48 = vadd.f32 %v2163_v5, %v2096_v4  ;;  %v2072_v8 = vpop.f32.mrf.mxu1 }
 0x240   : > { %v2085_v2 = vadd.f32 %v2072_v8, %v2019_v62 }
 0x241   : > { %v2185_v7 = vmax.f32 %v2177_v48, 0.0 }
 0x242   : > { %v2097_v35 = vadd.f32 %v3245_v26, %v2085_v2 }
 0x243   : > { %2193 = vst.msk [vmem:[%s3253_s12 + $0x20] sm:$0xff] %vm1478_vm6, %v2185_v7 }
 0x246   : > { %v2165_v50 = vpop.f32.mrf.mxu2 }
 0x247   : > { %v2178_v11 = vadd.f32 %v2165_v50, %v2097_v35  ;;  %v2075_v56 = vpop.f32.mrf.mxu1 }
 0x248   : > { %v2086_v16 = vadd.f32 %v2075_v56, %v2020_v3 }
 0x249   : > { %v2186_v9 = vmax.f32 %v2178_v11, 0.0 }
 0x24a   : > { %v2098_v46 = vadd.f32 %v3245_v26, %v2086_v16 }
 0x24b   : > { %2194 = vst.msk [vmem:[%s3253_s12 + $0x28] sm:$0xff] %vm1478_vm6, %v2186_v9 }
 0x24e   : > { %v2168_v38 = vpop.f32.mrf.mxu2 }
 0x24f   : > { %v2179_v37 = vadd.f32 %v2168_v38, %v2098_v46  ;;  %v2077_v54 = vpop.f32.mrf.mxu1 }
 0x250   : > { %v2087_v40 = vadd.f32 %v2077_v54, %v2021_v57 }
 0x251   : > { %v2187_v21 = vmax.f32 %v2179_v37, 0.0 }
 0x252   : > { %v2099_v43 = vadd.f32 %v3245_v26, %v2087_v40 }
 0x253   : > { %2195 = vst.msk [vmem:[%s3253_s12 + $0x30] sm:$0xff] %vm1478_vm6, %v2187_v21 }
 0x256   : > { %v2170_v22 = vpop.f32.mrf.mxu2 }
 0x257   : > { %v2180_v49 = vadd.f32 %v2170_v22, %v2099_v43 }
 0x259   : > { %v2188_v28 = vmax.f32 %v2180_v49, 0.0 }
 0x25b   : > { %2196 = vst.msk [vmem:[%s3253_s12 + $0x38] sm:$0xff] %vm1478_vm6, %v2188_v28 }
 0x25c PF: > { %s19_s30 = sadd.s32 1, %s2587_s30  }
 0x25d   : > { %p16_p4 = scmp.ge.s32.totalorder %s19_s30, 4  }
 0x25f   :  { %18 = sbr.rel (!%p16_p4) target bundleno = 1 (0x1), region = 115 }

</bundles_post_ra>
